<compile_context>
chip_gen: v7x
topology: tpu7x:2x2x1
jax: 0.10.0
libtpu: 0.0.40
codegen_flags: <defaults>
</compile_context>

<pallas_src>
import functools
import math

import jax
import jax.numpy as jnp
from jax.experimental import pallas as pl
from jax.experimental.pallas import tpu as pltpu


_LN_EPS = 1e-5  # torch.nn.LayerNorm default


def _layer_norm(h, gamma, beta, eps):
    mu = jnp.mean(h, axis=-1, keepdims=True)
    c = h - mu
    var = jnp.mean(c * c, axis=-1, keepdims=True)
    return c * jax.lax.rsqrt(var + eps) * gamma + beta


def _gelu_tanh(x):
    # TODO(synk): PyTorch F.gelu default is the exact erf formulation; the tanh
    # approximation is used because lax.erf has no guaranteed Mosaic lowering.
    c = math.sqrt(2.0 / math.pi)
    return 0.5 * x * (1.0 + jnp.tanh(c * (x + 0.044715 * x * x * x)))


def _gsad_kernel(x_ref, objs_ref,
                 w_lin_ref, b_lin_ref,
                 g1_ref, be1_ref,
                 wq_ref, wk_ref, wv_ref, wo_ref, bo_ref,
                 g2_ref, be2_ref,
                 wff1_ref, bff1_ref, wff2_ref, bff2_ref,
                 gates_ref, o_ref,
                 *, n_heads, d_head):
    f32 = jnp.float32
    bf16 = jnp.bfloat16

    bb, nv, d = x_ref.shape
    no = objs_ref.shape[1]
    s = nv + no

    x = x_ref[...]                          # (bb, nv, D)  f32
    objs = objs_ref[...]                    # (bb, no, Dc) f32

    # objs = self.linear(objs)              (weights stored as (in, out) == W.T)
    objs2 = objs.reshape(bb * no, objs.shape[-1]).astype(bf16)
    objs_p = jnp.dot(objs2, w_lin_ref[...],
                     preferred_element_type=f32) + b_lin_ref[...]
    objs_p = objs_p.reshape(bb, no, d)

    # cat along the sequence axis, then norm1 (f32 statistics).
    # NOTE: n_visual / n_objs should be multiples of 8 (sublane aligned).
    h = jnp.concatenate([x, objs_p], axis=1)                   # (bb, S, D)
    hn = _layer_norm(h, g1_ref[...], be1_ref[...], _LN_EPS)    # f32

    hn_all = hn.reshape(bb * s, d).astype(bf16)                # keys / values
    hn_vis = hn[:, :nv, :].reshape(bb * nv, d).astype(bf16)    # queries only

    # q/k/v projections (no bias in diffusers Attention).  1/sqrt(d_head) is
    # already folded into wq by the wrapper.  Batch tile folded into M rows.
    q = jnp.dot(hn_vis, wq_ref[...], preferred_element_type=f32)   # (bb*nv, H*dh)
    k = jnp.dot(hn_all, wk_ref[...], preferred_element_type=f32)   # (bb*S,  H*dh)
    v = jnp.dot(hn_all, wv_ref[...], preferred_element_type=f32)

    q3 = q.reshape(bb, nv, n_heads * d_head).astype(bf16)
    k3 = k.reshape(bb, s, n_heads * d_head).astype(bf16)
    v3 = v.reshape(bb, s, n_heads * d_head).astype(bf16)

    # Multi-head attention; accumulate the output projection per head instead
    # of lane-concatenating head outputs.
    attn = jnp.zeros((bb * nv, d), dtype=f32)
    for hd in range(n_heads):                                  # static unroll
        lo = hd * d_head
        qh = q3[:, :, lo:lo + d_head]
        kh = k3[:, :, lo:lo + d_head]
        vh = v3[:, :, lo:lo + d_head]
        sc = jnp.einsum('bqd,bkd->bqk', qh, kh, preferred_element_type=f32)
        sc = sc - jnp.max(sc, axis=-1, keepdims=True)
        p = jnp.exp(sc)
        p = p * pl.reciprocal(jnp.sum(p, axis=-1, keepdims=True), approx=True)
        pv = jnp.einsum('bqk,bkd->bqd', p.astype(bf16), vh,
                        preferred_element_type=f32)            # (bb, nv, dh)
        attn = attn + jnp.dot(pv.reshape(bb * nv, d_head).astype(bf16),
                              wo_ref[hd], preferred_element_type=f32)
    attn = attn + bo_ref[...]

    g_attn = gates_ref[0]       # tanh(alpha_attn), precomputed (SMEM scalar)
    g_dense = gates_ref[1]      # tanh(alpha_dense)

    x1 = x.reshape(bb * nv, d) + g_attn * attn                 # f32 residual

    # FeedForward(query_dim, activation_fn='geglu') on norm2(x1); dropout = id.
    x1n = _layer_norm(x1, g2_ref[...], be2_ref[...], _LN_EPS)
    hg = jnp.dot(x1n.astype(bf16), wff1_ref[...],
                 preferred_element_type=f32) + bff1_ref[...]
    di = hg.shape[-1] // 2
    ff = hg[:, :di] * _gelu_tanh(hg[:, di:])                   # GEGLU (f32)
    ff = jnp.dot(ff.astype(bf16), wff2_ref[...],
                 preferred_element_type=f32) + bff2_ref[...]

    out = x1 + g_dense * ff
    o_ref[...] = out.reshape(bb, nv, d).astype(o_ref.dtype)


_WEIGHT_ORDER = ("w_lin", "b_lin", "g1", "b1",
                 "wq", "wk", "wv", "wo", "bo",
                 "g2", "b2",
                 "wff1", "bff1", "wff2", "bff2")


def gated_self_attention_dense(x, objs, params, *, n_heads, d_head,
                               batch_block=None):
    """x: (B, n_visual, query_dim); objs: (B, n_objs, context_dim)."""
    b, n_visual, d = x.shape
    _, n_objs, d_ctx = objs.shape
    f32, bf16 = jnp.float32, jnp.bfloat16

    # Batch tiling: fold several batch elements per grid step (MXU fill,
    # amortized ~0.35us/step overhead) but keep >= 2 parallel grid steps when
    # possible so both v7x TensorCores stay busy.
    if batch_block is None:
        batch_block = min(b, 8)
        if pl.cdiv(b, batch_block) < 2 and b > 1:
            batch_block = (b + 1) // 2
    n_tiles = pl.cdiv(b, batch_block)
    pad = n_tiles * batch_block - b
    if pad:
        x = jnp.pad(x, ((0, pad), (0, 0), (0, 0)))
        objs = jnp.pad(objs, ((0, pad), (0, 0), (0, 0)))

    scale = 1.0 / math.sqrt(d_head)
    w = {
        # matmul weights in bf16 ((in, out) layout == PyTorch weight.T)
        "w_lin": params["w_lin"].astype(bf16),
        "wq": (params["wq"] * scale).astype(bf16),   # fold attention scale here
        "wk": params["wk"].astype(bf16),
        "wv": params["wv"].astype(bf16),
        # out-projection pre-split per head -> kernel uses leading-axis slices
        "wo": params["wo"].reshape(n_heads, d_head, d).astype(bf16),
        "wff1": params["wff1"].astype(bf16),
        "wff2": params["wff2"].astype(bf16),
        # biases / LayerNorm params stay f32
        "b_lin": params["b_lin"].astype(f32),
        "bo": params["bo"].astype(f32),
        "bff1": params["bff1"].astype(f32),
        "bff2": params["bff2"].astype(f32),
        "g1": params["g1"].astype(f32), "b1": params["b1"].astype(f32),
        "g2": params["g2"].astype(f32), "b2": params["b2"].astype(f32),
    }
    weights = [w[k] for k in _WEIGHT_ORDER]
    # tanh(alpha_*) computed once on the host graph; shipped as SMEM scalars.
    gates = jnp.tanh(params["alphas"].reshape(-1).astype(f32))   # (2,)

    in_specs = [
        pl.BlockSpec((batch_block, n_visual, d), lambda i: (i, 0, 0)),
        pl.BlockSpec((batch_block, n_objs, d_ctx), lambda i: (i, 0, 0)),
    ]
    # Full-array weight blocks with constant index maps -> loaded once, resident.
    for wt in weights:
        in_specs.append(pl.BlockSpec(wt.shape, lambda i, _nd=wt.ndim: (0,) * _nd))
    in_specs.append(pl.BlockSpec(memory_space=pltpu.MemorySpace.SMEM))

    kernel = functools.partial(_gsad_kernel, n_heads=n_heads, d_head=d_head)

    out = pl.pallas_call(
        kernel,
        out_shape=jax.ShapeDtypeStruct((n_tiles * batch_block, n_visual, d),
                                       x.dtype),
        grid=(n_tiles,),
        in_specs=in_specs,
        out_specs=pl.BlockSpec((batch_block, n_visual, d), lambda i: (i, 0, 0)),
        compiler_params=pltpu.CompilerParams(
            dimension_semantics=("parallel",),
            vmem_limit_bytes=48 * 1024 * 1024,
        ),
    )(x, objs, *weights, gates)
    return out[:b] if pad else out


def _reference(x, objs, params, *, n_heads, d_head):
    """Plain-JAX f32 reference with the same math (high-precision matmuls)."""
    hp = jax.lax.Precision.HIGHEST
    dot = functools.partial(jnp.dot, precision=hp)

    objs_p = dot(objs, params["w_lin"]) + params["b_lin"]
    h = jnp.concatenate([x, objs_p], axis=1)
    hn = _layer_norm(h, params["g1"], params["b1"], _LN_EPS)

    q = dot(hn, params["wq"])
    k = dot(hn, params["wk"])
    v = dot(hn, params["wv"])
    b, s, dh_all = q.shape

    def split(t):
        return t.reshape(b, s, n_heads, d_head).transpose(0, 2, 1, 3)

    qh, kh, vh = split(q), split(k), split(v)
    sc = jnp.einsum("bhqd,bhkd->bhqk", qh, kh, precision=hp) / math.sqrt(d_head)
    p = jax.nn.softmax(sc, axis=-1)
    o = jnp.einsum("bhqk,bhkd->bhqd", p, vh, precision=hp)
    o = o.transpose(0, 2, 1, 3).reshape(b, s, dh_all)
    attn = dot(o, params["wo"]) + params["bo"]

    g_attn = jnp.tanh(params["alphas"][0, 0])
    g_dense = jnp.tanh(params["alphas"][0, 1])

    n_visual = x.shape[1]
    x1 = x + g_attn * attn[:, :n_visual, :]

    x1n = _layer_norm(x1, params["g2"], params["b2"], _LN_EPS)
    hg = dot(x1n, params["wff1"]) + params["bff1"]
    di = hg.shape[-1] // 2
    ff = hg[..., :di] * _gelu_tanh(hg[..., di:])
    ff = dot(ff, params["wff2"]) + params["bff2"]
    return x1 + g_dense * ff


if __name__ == "__main__":
    batch = 2
    n_visual = 24
    n_objs = 8
    query_dim = 128          # lane-dense last dim (multiple of 128)
    context_dim = 64
    n_heads = 4
    d_head = 32              # n_heads * d_head == query_dim
    inner_dim = 4 * query_dim

    key = jax.random.PRNGKey(0)
    ks = jax.random.split(key, 20)

    def w_init(k, shape, fan_in):
        return jax.random.normal(k, shape, dtype=jnp.float32) / math.sqrt(fan_in)

    def b_init(k, shape):
        return 0.05 * jax.random.normal(k, shape, dtype=jnp.float32)

    x = jax.random.normal(ks[0], (batch, n_visual, query_dim), dtype=jnp.float32)
    objs = jax.random.normal(ks[1], (batch, n_objs, context_dim), dtype=jnp.float32)

    params = {
        # all linear weights stored in (in, out) layout (== PyTorch weight.T)
        "w_lin": w_init(ks[2], (context_dim, query_dim), context_dim),
        "b_lin": b_init(ks[3], (1, query_dim)),
        "g1": 1.0 + 0.05 * jax.random.normal(ks[4], (1, query_dim), dtype=jnp.float32),
        "b1": b_init(ks[5], (1, query_dim)),
        "wq": w_init(ks[6], (query_dim, n_heads * d_head), query_dim),
        "wk": w_init(ks[7], (query_dim, n_heads * d_head), query_dim),
        "wv": w_init(ks[8], (query_dim, n_heads * d_head), query_dim),
        "wo": w_init(ks[9], (n_heads * d_head, query_dim), n_heads * d_head),
        "bo": b_init(ks[10], (1, query_dim)),
        "g2": 1.0 + 0.05 * jax.random.normal(ks[11], (1, query_dim), dtype=jnp.float32),
        "b2": b_init(ks[12], (1, query_dim)),
        "wff1": w_init(ks[13], (query_dim, 2 * inner_dim), query_dim),
        "bff1": b_init(ks[14], (1, 2 * inner_dim)),
        "wff2": w_init(ks[15], (inner_dim, query_dim), inner_dim),
        "bff2": b_init(ks[16], (1, query_dim)),
        # [alpha_attn, alpha_dense] — module inits them to 0.0; use nonzero
        # values here so both gated branches are actually exercised.
        "alphas": jnp.array([[0.5, -0.25]], dtype=jnp.float32),
    }

    out = gated_self_attention_dense(x, objs, params, n_heads=n_heads, d_head=d_head)
    out = jax.block_until_ready(out)

    ref = _reference(x, objs, params, n_heads=n_heads, d_head=d_head)
    assert out.shape == (batch, n_visual, query_dim)
    max_err = float(jnp.max(jnp.abs(out - ref)))
    # Kernel uses bf16 MXU operands (f32 accumulation); reference is full f32.
    assert jnp.allclose(out, ref, rtol=4e-2, atol=3e-2), f"mismatch vs reference: {max_err}"

    print("KERNEL_OK")
</pallas_src>

<mosaic_0001>
module attributes {stable_mosaic.version = 11 : i64} {
  func.func @_gsad_kernel(%arg0: i32, %arg1: memref<1x24x128xf32, #tpu.memory_space<vmem>>, %arg2: memref<1x8x64xf32, #tpu.memory_space<vmem>>, %arg3: memref<64x128xbf16, #tpu.memory_space<vmem>>, %arg4: memref<1x128xf32, #tpu.memory_space<vmem>>, %arg5: memref<1x128xf32, #tpu.memory_space<vmem>>, %arg6: memref<1x128xf32, #tpu.memory_space<vmem>>, %arg7: memref<128x128xbf16, #tpu.memory_space<vmem>>, %arg8: memref<128x128xbf16, #tpu.memory_space<vmem>>, %arg9: memref<128x128xbf16, #tpu.memory_space<vmem>>, %arg10: memref<4x32x128xbf16, #tpu.memory_space<vmem>>, %arg11: memref<1x128xf32, #tpu.memory_space<vmem>>, %arg12: memref<1x128xf32, #tpu.memory_space<vmem>>, %arg13: memref<1x128xf32, #tpu.memory_space<vmem>>, %arg14: memref<128x1024xbf16, #tpu.memory_space<vmem>>, %arg15: memref<1x1024xf32, #tpu.memory_space<vmem>>, %arg16: memref<512x128xbf16, #tpu.memory_space<vmem>>, %arg17: memref<1x128xf32, #tpu.memory_space<vmem>>, %arg18: memref<2xf32, #tpu.memory_space<smem>>, %arg19: memref<1x24x128xf32, #tpu.memory_space<vmem>>) attributes {dimension_semantics = [#tpu.dimension_semantics<parallel>], iteration_bounds = array<i64: 2>, scalar_prefetch = 0 : i64, scratch_operands = 0 : i64, tpu.core_type = #tpu.core_type<tc>, window_params = [{transform_indices = @transform_0, window_bounds = array<i64: 1, 24, 128>}, {transform_indices = @transform_1, window_bounds = array<i64: 1, 8, 64>}, {pipeline_mode = #tpu.pipeline_mode<synchronous>, transform_indices = @transform_2, window_bounds = array<i64: 64, 128>}, {pipeline_mode = #tpu.pipeline_mode<synchronous>, transform_indices = @transform_3, window_bounds = array<i64: 1, 128>}, {pipeline_mode = #tpu.pipeline_mode<synchronous>, transform_indices = @transform_4, window_bounds = array<i64: 1, 128>}, {pipeline_mode = #tpu.pipeline_mode<synchronous>, transform_indices = @transform_5, window_bounds = array<i64: 1, 128>}, {pipeline_mode = #tpu.pipeline_mode<synchronous>, transform_indices = @transform_6, window_bounds = array<i64: 128, 128>}, {pipeline_mode = #tpu.pipeline_mode<synchronous>, transform_indices = @transform_7, window_bounds = array<i64: 128, 128>}, {pipeline_mode = #tpu.pipeline_mode<synchronous>, transform_indices = @transform_8, window_bounds = array<i64: 128, 128>}, {pipeline_mode = #tpu.pipeline_mode<synchronous>, transform_indices = @transform_9, window_bounds = array<i64: 4, 32, 128>}, {pipeline_mode = #tpu.pipeline_mode<synchronous>, transform_indices = @transform_10, window_bounds = array<i64: 1, 128>}, {pipeline_mode = #tpu.pipeline_mode<synchronous>, transform_indices = @transform_11, window_bounds = array<i64: 1, 128>}, {pipeline_mode = #tpu.pipeline_mode<synchronous>, transform_indices = @transform_12, window_bounds = array<i64: 1, 128>}, {pipeline_mode = #tpu.pipeline_mode<synchronous>, transform_indices = @transform_13, window_bounds = array<i64: 128, 1024>}, {pipeline_mode = #tpu.pipeline_mode<synchronous>, transform_indices = @transform_14, window_bounds = array<i64: 1, 1024>}, {pipeline_mode = #tpu.pipeline_mode<synchronous>, transform_indices = @transform_15, window_bounds = array<i64: 512, 128>}, {pipeline_mode = #tpu.pipeline_mode<synchronous>, transform_indices = @transform_16, window_bounds = array<i64: 1, 128>}, {transform_indices = @transform_17, window_bounds = array<i64: 2>}, {transform_indices = @transform_18, window_bounds = array<i64: 1, 24, 128>}]} {
    %c0 = arith.constant 0 : index
    %c0_0 = arith.constant 0 : index
    %c0_1 = arith.constant 0 : index
    %0 = vector.load %arg1[%c0, %c0_0, %c0_1] : memref<1x24x128xf32, #tpu.memory_space<vmem>>, vector<1x24x128xf32>
    %c0_2 = arith.constant 0 : index
    %c0_3 = arith.constant 0 : index
    %c0_4 = arith.constant 0 : index
    %1 = vector.load %arg2[%c0_2, %c0_3, %c0_4] : memref<1x8x64xf32, #tpu.memory_space<vmem>>, vector<1x8x64xf32>
    %2 = vector.shape_cast %1 : vector<1x8x64xf32> to vector<8x64xf32>
    %3 = arith.truncf %2 : vector<8x64xf32> to vector<8x64xbf16>
    %c0_5 = arith.constant 0 : index
    %c0_6 = arith.constant 0 : index
    %4 = vector.load %arg3[%c0_5, %c0_6] : memref<64x128xbf16, #tpu.memory_space<vmem>>, vector<64x128xbf16>
    %cst = arith.constant dense<0.000000e+00> : vector<8x128xf32>
    %5 = tpu.matmul %3, %4, %cst {dimension_numbers = #tpu.dot_dimension_numbers<[1], [0], [0], [1], [0, 0, 1, 1], [], []>} : vector<8x64xbf16>, vector<64x128xbf16>, vector<8x128xf32> -> vector<8x128xf32>
    %c0_7 = arith.constant 0 : index
    %c0_8 = arith.constant 0 : index
    %6 = vector.load %arg4[%c0_7, %c0_8] : memref<1x128xf32, #tpu.memory_space<vmem>>, vector<1x128xf32>
    %7 = vector.broadcast %6 : vector<1x128xf32> to vector<8x128xf32>
    %8 = arith.addf %5, %7 : vector<8x128xf32>
    %9 = vector.shape_cast %8 : vector<8x128xf32> to vector<1x8x128xf32>
    %10 = tpu.concatenate %0, %9 in 1 : vector<1x24x128xf32>, vector<1x8x128xf32> -> vector<1x32x128xf32>
    %c0_9 = arith.constant 0 : index
    %c0_10 = arith.constant 0 : index
    %11 = vector.load %arg5[%c0_9, %c0_10] : memref<1x128xf32, #tpu.memory_space<vmem>>, vector<1x128xf32>
    %c0_11 = arith.constant 0 : index
    %c0_12 = arith.constant 0 : index
    %12 = vector.load %arg6[%c0_11, %c0_12] : memref<1x128xf32, #tpu.memory_space<vmem>>, vector<1x128xf32>
    %cst_13 = arith.constant dense<0.000000e+00> : vector<1x32xf32>
    %13 = vector.multi_reduction <add>, %10, %cst_13 [2] : vector<1x32x128xf32> to vector<1x32xf32>
    %14 = vector.shape_cast %13 : vector<1x32xf32> to vector<1x32x1xf32>
    %cst_14 = arith.constant 1.280000e+02 : f32
    %15 = vector.broadcast %cst_14 : f32 to vector<1x32x1xf32>
    %16 = arith.divf %14, %15 : vector<1x32x1xf32>
    %17 = vector.broadcast %16 : vector<1x32x1xf32> to vector<1x32x128xf32>
    %18 = arith.subf %10, %17 : vector<1x32x128xf32>
    %19 = arith.mulf %18, %18 : vector<1x32x128xf32>
    %cst_15 = arith.constant dense<0.000000e+00> : vector<1x32xf32>
    %20 = vector.multi_reduction <add>, %19, %cst_15 [2] : vector<1x32x128xf32> to vector<1x32xf32>
    %21 = vector.shape_cast %20 : vector<1x32xf32> to vector<1x32x1xf32>
    %cst_16 = arith.constant 1.280000e+02 : f32
    %22 = vector.broadcast %cst_16 : f32 to vector<1x32x1xf32>
    %23 = arith.divf %21, %22 : vector<1x32x1xf32>
    %cst_17 = arith.constant 9.99999974E-6 : f32
    %24 = vector.broadcast %cst_17 : f32 to vector<1x32x1xf32>
    %25 = arith.addf %23, %24 : vector<1x32x1xf32>
    %26 = math.rsqrt %25 : vector<1x32x1xf32>
    %27 = vector.broadcast %26 : vector<1x32x1xf32> to vector<1x32x128xf32>
    %28 = arith.mulf %18, %27 : vector<1x32x128xf32>
    %29 = vector.shape_cast %11 : vector<1x128xf32> to vector<1x1x128xf32>
    %30 = vector.broadcast %29 : vector<1x1x128xf32> to vector<1x32x128xf32>
    %31 = arith.mulf %28, %30 : vector<1x32x128xf32>
    %32 = vector.shape_cast %12 : vector<1x128xf32> to vector<1x1x128xf32>
    %33 = vector.broadcast %32 : vector<1x1x128xf32> to vector<1x32x128xf32>
    %34 = arith.addf %31, %33 : vector<1x32x128xf32>
    %35 = vector.shape_cast %34 : vector<1x32x128xf32> to vector<32x128xf32>
    %36 = arith.truncf %35 : vector<32x128xf32> to vector<32x128xbf16>
    %37 = vector.extract_strided_slice %34 {offsets = [0, 0, 0], sizes = [1, 24, 128], strides = [1, 1, 1]} : vector<1x32x128xf32> to vector<1x24x128xf32>
    %38 = vector.shape_cast %37 : vector<1x24x128xf32> to vector<24x128xf32>
    %39 = arith.truncf %38 : vector<24x128xf32> to vector<24x128xbf16>
    %c0_18 = arith.constant 0 : index
    %c0_19 = arith.constant 0 : index
    %40 = vector.load %arg7[%c0_18, %c0_19] : memref<128x128xbf16, #tpu.memory_space<vmem>>, vector<128x128xbf16>
    %cst_20 = arith.constant dense<0.000000e+00> : vector<24x128xf32>
    %41 = tpu.matmul %39, %40, %cst_20 {dimension_numbers = #tpu.dot_dimension_numbers<[1], [0], [0], [1], [0, 0, 1, 1], [], []>} : vector<24x128xbf16>, vector<128x128xbf16>, vector<24x128xf32> -> vector<24x128xf32>
    %c0_21 = arith.constant 0 : index
    %c0_22 = arith.constant 0 : index
    %42 = vector.load %arg8[%c0_21, %c0_22] : memref<128x128xbf16, #tpu.memory_space<vmem>>, vector<128x128xbf16>
    %cst_23 = arith.constant dense<0.000000e+00> : vector<32x128xf32>
    %43 = tpu.matmul %36, %42, %cst_23 {dimension_numbers = #tpu.dot_dimension_numbers<[1], [0], [0], [1], [0, 0, 1, 1], [], []>} : vector<32x128xbf16>, vector<128x128xbf16>, vector<32x128xf32> -> vector<32x128xf32>
    %c0_24 = arith.constant 0 : index
    %c0_25 = arith.constant 0 : index
    %44 = vector.load %arg9[%c0_24, %c0_25] : memref<128x128xbf16, #tpu.memory_space<vmem>>, vector<128x128xbf16>
    %cst_26 = arith.constant dense<0.000000e+00> : vector<32x128xf32>
    %45 = tpu.matmul %36, %44, %cst_26 {dimension_numbers = #tpu.dot_dimension_numbers<[1], [0], [0], [1], [0, 0, 1, 1], [], []>} : vector<32x128xbf16>, vector<128x128xbf16>, vector<32x128xf32> -> vector<32x128xf32>
    %46 = vector.shape_cast %41 : vector<24x128xf32> to vector<1x24x128xf32>
    %47 = arith.truncf %46 : vector<1x24x128xf32> to vector<1x24x128xbf16>
    %48 = vector.shape_cast %43 : vector<32x128xf32> to vector<1x32x128xf32>
    %49 = arith.truncf %48 : vector<1x32x128xf32> to vector<1x32x128xbf16>
    %50 = vector.shape_cast %45 : vector<32x128xf32> to vector<1x32x128xf32>
    %51 = arith.truncf %50 : vector<1x32x128xf32> to vector<1x32x128xbf16>
    %cst_27 = arith.constant 0.000000e+00 : f32
    %52 = vector.broadcast %cst_27 : f32 to vector<24x128xf32>
    %53 = vector.extract_strided_slice %47 {offsets = [0, 0, 0], sizes = [1, 24, 32], strides = [1, 1, 1]} : vector<1x24x128xbf16> to vector<1x24x32xbf16>
    %54 = vector.extract_strided_slice %49 {offsets = [0, 0, 0], sizes = [1, 32, 32], strides = [1, 1, 1]} : vector<1x32x128xbf16> to vector<1x32x32xbf16>
    %55 = vector.extract_strided_slice %51 {offsets = [0, 0, 0], sizes = [1, 32, 32], strides = [1, 1, 1]} : vector<1x32x128xbf16> to vector<1x32x32xbf16>
    "tpu.trace_start"() <{level = 10 : i32, message = "bqd,bkd->bqk"}> : () -> ()
    %cst_28 = arith.constant dense<0.000000e+00> : vector<1x24x32xf32>
    %56 = tpu.matmul %53, %54, %cst_28 {dimension_numbers = #tpu.dot_dimension_numbers<[2], [2], [1], [1], [0, 0, 0, 1, 1, 1], [0], [0]>} : vector<1x24x32xbf16>, vector<1x32x32xbf16>, vector<1x24x32xf32> -> vector<1x24x32xf32>
    "tpu.trace_stop"() : () -> ()
    %cst_29 = arith.constant dense<0xFF800000> : vector<1x24xf32>
    %57 = vector.multi_reduction <maximumf>, %56, %cst_29 [2] : vector<1x24x32xf32> to vector<1x24xf32>
    %58 = vector.shape_cast %57 : vector<1x24xf32> to vector<1x24x1xf32>
    %59 = vector.broadcast %58 : vector<1x24x1xf32> to vector<1x24x32xf32>
    %60 = arith.subf %56, %59 : vector<1x24x32xf32>
    %61 = math.exp %60 : vector<1x24x32xf32>
    %cst_30 = arith.constant dense<0.000000e+00> : vector<1x24xf32>
    %62 = vector.multi_reduction <add>, %61, %cst_30 [2] : vector<1x24x32xf32> to vector<1x24xf32>
    %63 = vector.shape_cast %62 : vector<1x24xf32> to vector<1x24x1xf32>
    %64 = tpu.reciprocal %63 {approx = true} : vector<1x24x1xf32> -> vector<1x24x1xf32>
    %65 = vector.broadcast %64 : vector<1x24x1xf32> to vector<1x24x32xf32>
    %66 = arith.mulf %61, %65 : vector<1x24x32xf32>
    %67 = arith.truncf %66 : vector<1x24x32xf32> to vector<1x24x32xbf16>
    "tpu.trace_start"() <{level = 10 : i32, message = "bqk,bkd->bqd"}> : () -> ()
    %cst_31 = arith.constant dense<0.000000e+00> : vector<1x24x32xf32>
    %68 = tpu.matmul %67, %55, %cst_31 {dimension_numbers = #tpu.dot_dimension_numbers<[2], [1], [1], [2], [0, 0, 0, 1, 1, 2], [0], [0]>} : vector<1x24x32xbf16>, vector<1x32x32xbf16>, vector<1x24x32xf32> -> vector<1x24x32xf32>
    "tpu.trace_stop"() : () -> ()
    %69 = vector.shape_cast %68 : vector<1x24x32xf32> to vector<24x32xf32>
    %70 = arith.truncf %69 : vector<24x32xf32> to vector<24x32xbf16>
    %c0_32 = arith.constant 0 : index
    %c0_33 = arith.constant 0 : index
    %c0_34 = arith.constant 0 : index
    %71 = vector.load %arg10[%c0_32, %c0_33, %c0_34] : memref<4x32x128xbf16, #tpu.memory_space<vmem>>, vector<1x32x128xbf16>
    %72 = vector.shape_cast %71 : vector<1x32x128xbf16> to vector<32x128xbf16>
    %cst_35 = arith.constant dense<0.000000e+00> : vector<24x128xf32>
    %73 = tpu.matmul %70, %72, %cst_35 {dimension_numbers = #tpu.dot_dimension_numbers<[1], [0], [0], [1], [0, 0, 1, 1], [], []>} : vector<24x32xbf16>, vector<32x128xbf16>, vector<24x128xf32> -> vector<24x128xf32>
    %74 = arith.addf %52, %73 : vector<24x128xf32>
    %75 = vector.extract_strided_slice %47 {offsets = [0, 0, 32], sizes = [1, 24, 32], strides = [1, 1, 1]} : vector<1x24x128xbf16> to vector<1x24x32xbf16>
    %76 = vector.extract_strided_slice %49 {offsets = [0, 0, 32], sizes = [1, 32, 32], strides = [1, 1, 1]} : vector<1x32x128xbf16> to vector<1x32x32xbf16>
    %77 = vector.extract_strided_slice %51 {offsets = [0, 0, 32], sizes = [1, 32, 32], strides = [1, 1, 1]} : vector<1x32x128xbf16> to vector<1x32x32xbf16>
    "tpu.trace_start"() <{level = 10 : i32, message = "bqd,bkd->bqk"}> : () -> ()
    %cst_36 = arith.constant dense<0.000000e+00> : vector<1x24x32xf32>
    %78 = tpu.matmul %75, %76, %cst_36 {dimension_numbers = #tpu.dot_dimension_numbers<[2], [2], [1], [1], [0, 0, 0, 1, 1, 1], [0], [0]>} : vector<1x24x32xbf16>, vector<1x32x32xbf16>, vector<1x24x32xf32> -> vector<1x24x32xf32>
    "tpu.trace_stop"() : () -> ()
    %cst_37 = arith.constant dense<0xFF800000> : vector<1x24xf32>
    %79 = vector.multi_reduction <maximumf>, %78, %cst_37 [2] : vector<1x24x32xf32> to vector<1x24xf32>
    %80 = vector.shape_cast %79 : vector<1x24xf32> to vector<1x24x1xf32>
    %81 = vector.broadcast %80 : vector<1x24x1xf32> to vector<1x24x32xf32>
    %82 = arith.subf %78, %81 : vector<1x24x32xf32>
    %83 = math.exp %82 : vector<1x24x32xf32>
    %cst_38 = arith.constant dense<0.000000e+00> : vector<1x24xf32>
    %84 = vector.multi_reduction <add>, %83, %cst_38 [2] : vector<1x24x32xf32> to vector<1x24xf32>
    %85 = vector.shape_cast %84 : vector<1x24xf32> to vector<1x24x1xf32>
    %86 = tpu.reciprocal %85 {approx = true} : vector<1x24x1xf32> -> vector<1x24x1xf32>
    %87 = vector.broadcast %86 : vector<1x24x1xf32> to vector<1x24x32xf32>
    %88 = arith.mulf %83, %87 : vector<1x24x32xf32>
    %89 = arith.truncf %88 : vector<1x24x32xf32> to vector<1x24x32xbf16>
    "tpu.trace_start"() <{level = 10 : i32, message = "bqk,bkd->bqd"}> : () -> ()
    %cst_39 = arith.constant dense<0.000000e+00> : vector<1x24x32xf32>
    %90 = tpu.matmul %89, %77, %cst_39 {dimension_numbers = #tpu.dot_dimension_numbers<[2], [1], [1], [2], [0, 0, 0, 1, 1, 2], [0], [0]>} : vector<1x24x32xbf16>, vector<1x32x32xbf16>, vector<1x24x32xf32> -> vector<1x24x32xf32>
    "tpu.trace_stop"() : () -> ()
    %91 = vector.shape_cast %90 : vector<1x24x32xf32> to vector<24x32xf32>
    %92 = arith.truncf %91 : vector<24x32xf32> to vector<24x32xbf16>
    %c1 = arith.constant 1 : index
    %c0_40 = arith.constant 0 : index
    %c0_41 = arith.constant 0 : index
    %93 = vector.load %arg10[%c1, %c0_40, %c0_41] : memref<4x32x128xbf16, #tpu.memory_space<vmem>>, vector<1x32x128xbf16>
    %94 = vector.shape_cast %93 : vector<1x32x128xbf16> to vector<32x128xbf16>
    %cst_42 = arith.constant dense<0.000000e+00> : vector<24x128xf32>
    %95 = tpu.matmul %92, %94, %cst_42 {dimension_numbers = #tpu.dot_dimension_numbers<[1], [0], [0], [1], [0, 0, 1, 1], [], []>} : vector<24x32xbf16>, vector<32x128xbf16>, vector<24x128xf32> -> vector<24x128xf32>
    %96 = arith.addf %74, %95 : vector<24x128xf32>
    %97 = vector.extract_strided_slice %47 {offsets = [0, 0, 64], sizes = [1, 24, 32], strides = [1, 1, 1]} : vector<1x24x128xbf16> to vector<1x24x32xbf16>
    %98 = vector.extract_strided_slice %49 {offsets = [0, 0, 64], sizes = [1, 32, 32], strides = [1, 1, 1]} : vector<1x32x128xbf16> to vector<1x32x32xbf16>
    %99 = vector.extract_strided_slice %51 {offsets = [0, 0, 64], sizes = [1, 32, 32], strides = [1, 1, 1]} : vector<1x32x128xbf16> to vector<1x32x32xbf16>
    "tpu.trace_start"() <{level = 10 : i32, message = "bqd,bkd->bqk"}> : () -> ()
    %cst_43 = arith.constant dense<0.000000e+00> : vector<1x24x32xf32>
    %100 = tpu.matmul %97, %98, %cst_43 {dimension_numbers = #tpu.dot_dimension_numbers<[2], [2], [1], [1], [0, 0, 0, 1, 1, 1], [0], [0]>} : vector<1x24x32xbf16>, vector<1x32x32xbf16>, vector<1x24x32xf32> -> vector<1x24x32xf32>
    "tpu.trace_stop"() : () -> ()
    %cst_44 = arith.constant dense<0xFF800000> : vector<1x24xf32>
    %101 = vector.multi_reduction <maximumf>, %100, %cst_44 [2] : vector<1x24x32xf32> to vector<1x24xf32>
    %102 = vector.shape_cast %101 : vector<1x24xf32> to vector<1x24x1xf32>
    %103 = vector.broadcast %102 : vector<1x24x1xf32> to vector<1x24x32xf32>
    %104 = arith.subf %100, %103 : vector<1x24x32xf32>
    %105 = math.exp %104 : vector<1x24x32xf32>
    %cst_45 = arith.constant dense<0.000000e+00> : vector<1x24xf32>
    %106 = vector.multi_reduction <add>, %105, %cst_45 [2] : vector<1x24x32xf32> to vector<1x24xf32>
    %107 = vector.shape_cast %106 : vector<1x24xf32> to vector<1x24x1xf32>
    %108 = tpu.reciprocal %107 {approx = true} : vector<1x24x1xf32> -> vector<1x24x1xf32>
    %109 = vector.broadcast %108 : vector<1x24x1xf32> to vector<1x24x32xf32>
    %110 = arith.mulf %105, %109 : vector<1x24x32xf32>
    %111 = arith.truncf %110 : vector<1x24x32xf32> to vector<1x24x32xbf16>
    "tpu.trace_start"() <{level = 10 : i32, message = "bqk,bkd->bqd"}> : () -> ()
    %cst_46 = arith.constant dense<0.000000e+00> : vector<1x24x32xf32>
    %112 = tpu.matmul %111, %99, %cst_46 {dimension_numbers = #tpu.dot_dimension_numbers<[2], [1], [1], [2], [0, 0, 0, 1, 1, 2], [0], [0]>} : vector<1x24x32xbf16>, vector<1x32x32xbf16>, vector<1x24x32xf32> -> vector<1x24x32xf32>
    "tpu.trace_stop"() : () -> ()
    %113 = vector.shape_cast %112 : vector<1x24x32xf32> to vector<24x32xf32>
    %114 = arith.truncf %113 : vector<24x32xf32> to vector<24x32xbf16>
    %c2 = arith.constant 2 : index
    %c0_47 = arith.constant 0 : index
    %c0_48 = arith.constant 0 : index
    %115 = vector.load %arg10[%c2, %c0_47, %c0_48] : memref<4x32x128xbf16, #tpu.memory_space<vmem>>, vector<1x32x128xbf16>
    %116 = vector.shape_cast %115 : vector<1x32x128xbf16> to vector<32x128xbf16>
    %cst_49 = arith.constant dense<0.000000e+00> : vector<24x128xf32>
    %117 = tpu.matmul %114, %116, %cst_49 {dimension_numbers = #tpu.dot_dimension_numbers<[1], [0], [0], [1], [0, 0, 1, 1], [], []>} : vector<24x32xbf16>, vector<32x128xbf16>, vector<24x128xf32> -> vector<24x128xf32>
    %118 = arith.addf %96, %117 : vector<24x128xf32>
    %119 = vector.extract_strided_slice %47 {offsets = [0, 0, 96], sizes = [1, 24, 32], strides = [1, 1, 1]} : vector<1x24x128xbf16> to vector<1x24x32xbf16>
    %120 = vector.extract_strided_slice %49 {offsets = [0, 0, 96], sizes = [1, 32, 32], strides = [1, 1, 1]} : vector<1x32x128xbf16> to vector<1x32x32xbf16>
    %121 = vector.extract_strided_slice %51 {offsets = [0, 0, 96], sizes = [1, 32, 32], strides = [1, 1, 1]} : vector<1x32x128xbf16> to vector<1x32x32xbf16>
    "tpu.trace_start"() <{level = 10 : i32, message = "bqd,bkd->bqk"}> : () -> ()
    %cst_50 = arith.constant dense<0.000000e+00> : vector<1x24x32xf32>
    %122 = tpu.matmul %119, %120, %cst_50 {dimension_numbers = #tpu.dot_dimension_numbers<[2], [2], [1], [1], [0, 0, 0, 1, 1, 1], [0], [0]>} : vector<1x24x32xbf16>, vector<1x32x32xbf16>, vector<1x24x32xf32> -> vector<1x24x32xf32>
    "tpu.trace_stop"() : () -> ()
    %cst_51 = arith.constant dense<0xFF800000> : vector<1x24xf32>
    %123 = vector.multi_reduction <maximumf>, %122, %cst_51 [2] : vector<1x24x32xf32> to vector<1x24xf32>
    %124 = vector.shape_cast %123 : vector<1x24xf32> to vector<1x24x1xf32>
    %125 = vector.broadcast %124 : vector<1x24x1xf32> to vector<1x24x32xf32>
    %126 = arith.subf %122, %125 : vector<1x24x32xf32>
    %127 = math.exp %126 : vector<1x24x32xf32>
    %cst_52 = arith.constant dense<0.000000e+00> : vector<1x24xf32>
    %128 = vector.multi_reduction <add>, %127, %cst_52 [2] : vector<1x24x32xf32> to vector<1x24xf32>
    %129 = vector.shape_cast %128 : vector<1x24xf32> to vector<1x24x1xf32>
    %130 = tpu.reciprocal %129 {approx = true} : vector<1x24x1xf32> -> vector<1x24x1xf32>
    %131 = vector.broadcast %130 : vector<1x24x1xf32> to vector<1x24x32xf32>
    %132 = arith.mulf %127, %131 : vector<1x24x32xf32>
    %133 = arith.truncf %132 : vector<1x24x32xf32> to vector<1x24x32xbf16>
    "tpu.trace_start"() <{level = 10 : i32, message = "bqk,bkd->bqd"}> : () -> ()
    %cst_53 = arith.constant dense<0.000000e+00> : vector<1x24x32xf32>
    %134 = tpu.matmul %133, %121, %cst_53 {dimension_numbers = #tpu.dot_dimension_numbers<[2], [1], [1], [2], [0, 0, 0, 1, 1, 2], [0], [0]>} : vector<1x24x32xbf16>, vector<1x32x32xbf16>, vector<1x24x32xf32> -> vector<1x24x32xf32>
    "tpu.trace_stop"() : () -> ()
    %135 = vector.shape_cast %134 : vector<1x24x32xf32> to vector<24x32xf32>
    %136 = arith.truncf %135 : vector<24x32xf32> to vector<24x32xbf16>
    %c3 = arith.constant 3 : index
    %c0_54 = arith.constant 0 : index
    %c0_55 = arith.constant 0 : index
    %137 = vector.load %arg10[%c3, %c0_54, %c0_55] : memref<4x32x128xbf16, #tpu.memory_space<vmem>>, vector<1x32x128xbf16>
    %138 = vector.shape_cast %137 : vector<1x32x128xbf16> to vector<32x128xbf16>
    %cst_56 = arith.constant dense<0.000000e+00> : vector<24x128xf32>
    %139 = tpu.matmul %136, %138, %cst_56 {dimension_numbers = #tpu.dot_dimension_numbers<[1], [0], [0], [1], [0, 0, 1, 1], [], []>} : vector<24x32xbf16>, vector<32x128xbf16>, vector<24x128xf32> -> vector<24x128xf32>
    %140 = arith.addf %118, %139 : vector<24x128xf32>
    %c0_57 = arith.constant 0 : index
    %c0_58 = arith.constant 0 : index
    %141 = vector.load %arg11[%c0_57, %c0_58] : memref<1x128xf32, #tpu.memory_space<vmem>>, vector<1x128xf32>
    %142 = vector.broadcast %141 : vector<1x128xf32> to vector<24x128xf32>
    %143 = arith.addf %140, %142 : vector<24x128xf32>
    %c0_59 = arith.constant 0 : index
    %144 = memref.load %arg18[%c0_59] : memref<2xf32, #tpu.memory_space<smem>>
    %c1_60 = arith.constant 1 : index
    %145 = memref.load %arg18[%c1_60] : memref<2xf32, #tpu.memory_space<smem>>
    %146 = vector.shape_cast %0 : vector<1x24x128xf32> to vector<24x128xf32>
    %147 = vector.broadcast %144 : f32 to vector<24x128xf32>
    %148 = arith.mulf %147, %143 : vector<24x128xf32>
    %149 = arith.addf %146, %148 : vector<24x128xf32>
    %c0_61 = arith.constant 0 : index
    %c0_62 = arith.constant 0 : index
    %150 = vector.load %arg12[%c0_61, %c0_62] : memref<1x128xf32, #tpu.memory_space<vmem>>, vector<1x128xf32>
    %c0_63 = arith.constant 0 : index
    %c0_64 = arith.constant 0 : index
    %151 = vector.load %arg13[%c0_63, %c0_64] : memref<1x128xf32, #tpu.memory_space<vmem>>, vector<1x128xf32>
    %cst_65 = arith.constant dense<0.000000e+00> : vector<24xf32>
    %152 = vector.multi_reduction <add>, %149, %cst_65 [1] : vector<24x128xf32> to vector<24xf32>
    %153 = vector.shape_cast %152 : vector<24xf32> to vector<24x1xf32>
    %cst_66 = arith.constant 1.280000e+02 : f32
    %154 = vector.broadcast %cst_66 : f32 to vector<24x1xf32>
    %155 = arith.divf %153, %154 : vector<24x1xf32>
    %156 = vector.broadcast %155 : vector<24x1xf32> to vector<24x128xf32>
    %157 = arith.subf %149, %156 : vector<24x128xf32>
    %158 = arith.mulf %157, %157 : vector<24x128xf32>
    %cst_67 = arith.constant dense<0.000000e+00> : vector<24xf32>
    %159 = vector.multi_reduction <add>, %158, %cst_67 [1] : vector<24x128xf32> to vector<24xf32>
    %160 = vector.shape_cast %159 : vector<24xf32> to vector<24x1xf32>
    %cst_68 = arith.constant 1.280000e+02 : f32
    %161 = vector.broadcast %cst_68 : f32 to vector<24x1xf32>
    %162 = arith.divf %160, %161 : vector<24x1xf32>
    %cst_69 = arith.constant 9.99999974E-6 : f32
    %163 = vector.broadcast %cst_69 : f32 to vector<24x1xf32>
    %164 = arith.addf %162, %163 : vector<24x1xf32>
    %165 = math.rsqrt %164 : vector<24x1xf32>
    %166 = vector.broadcast %165 : vector<24x1xf32> to vector<24x128xf32>
    %167 = arith.mulf %157, %166 : vector<24x128xf32>
    %168 = vector.broadcast %150 : vector<1x128xf32> to vector<24x128xf32>
    %169 = arith.mulf %167, %168 : vector<24x128xf32>
    %170 = vector.broadcast %151 : vector<1x128xf32> to vector<24x128xf32>
    %171 = arith.addf %169, %170 : vector<24x128xf32>
    %172 = arith.truncf %171 : vector<24x128xf32> to vector<24x128xbf16>
    %c0_70 = arith.constant 0 : index
    %c0_71 = arith.constant 0 : index
    %173 = vector.load %arg14[%c0_70, %c0_71] : memref<128x1024xbf16, #tpu.memory_space<vmem>>, vector<128x1024xbf16>
    %cst_72 = arith.constant dense<0.000000e+00> : vector<24x1024xf32>
    %174 = tpu.matmul %172, %173, %cst_72 {dimension_numbers = #tpu.dot_dimension_numbers<[1], [0], [0], [1], [0, 0, 1, 1], [], []>} : vector<24x128xbf16>, vector<128x1024xbf16>, vector<24x1024xf32> -> vector<24x1024xf32>
    %c0_73 = arith.constant 0 : index
    %c0_74 = arith.constant 0 : index
    %175 = vector.load %arg15[%c0_73, %c0_74] : memref<1x1024xf32, #tpu.memory_space<vmem>>, vector<1x1024xf32>
    %176 = vector.broadcast %175 : vector<1x1024xf32> to vector<24x1024xf32>
    %177 = arith.addf %174, %176 : vector<24x1024xf32>
    %178 = vector.extract_strided_slice %177 {offsets = [0, 0], sizes = [24, 512], strides = [1, 1]} : vector<24x1024xf32> to vector<24x512xf32>
    %179 = vector.extract_strided_slice %177 {offsets = [0, 512], sizes = [24, 512], strides = [1, 1]} : vector<24x1024xf32> to vector<24x512xf32>
    %cst_75 = arith.constant 5.000000e-01 : f32
    %180 = vector.broadcast %cst_75 : f32 to vector<24x512xf32>
    %181 = arith.mulf %180, %179 : vector<24x512xf32>
    %cst_76 = arith.constant 4.471500e-02 : f32
    %182 = vector.broadcast %cst_76 : f32 to vector<24x512xf32>
    %183 = arith.mulf %182, %179 : vector<24x512xf32>
    %184 = arith.mulf %183, %179 : vector<24x512xf32>
    %185 = arith.mulf %184, %179 : vector<24x512xf32>
    %186 = arith.addf %179, %185 : vector<24x512xf32>
    %cst_77 = arith.constant 0.797884583 : f32
    %187 = vector.broadcast %cst_77 : f32 to vector<24x512xf32>
    %188 = arith.mulf %187, %186 : vector<24x512xf32>
    %189 = math.tanh %188 : vector<24x512xf32>
    %cst_78 = arith.constant 1.000000e+00 : f32
    %190 = vector.broadcast %cst_78 : f32 to vector<24x512xf32>
    %191 = arith.addf %190, %189 : vector<24x512xf32>
    %192 = arith.mulf %181, %191 : vector<24x512xf32>
    %193 = arith.mulf %178, %192 : vector<24x512xf32>
    %194 = arith.truncf %193 : vector<24x512xf32> to vector<24x512xbf16>
    %c0_79 = arith.constant 0 : index
    %c0_80 = arith.constant 0 : index
    %195 = vector.load %arg16[%c0_79, %c0_80] : memref<512x128xbf16, #tpu.memory_space<vmem>>, vector<512x128xbf16>
    %cst_81 = arith.constant dense<0.000000e+00> : vector<24x128xf32>
    %196 = tpu.matmul %194, %195, %cst_81 {dimension_numbers = #tpu.dot_dimension_numbers<[1], [0], [0], [1], [0, 0, 1, 1], [], []>} : vector<24x512xbf16>, vector<512x128xbf16>, vector<24x128xf32> -> vector<24x128xf32>
    %c0_82 = arith.constant 0 : index
    %c0_83 = arith.constant 0 : index
    %197 = vector.load %arg17[%c0_82, %c0_83] : memref<1x128xf32, #tpu.memory_space<vmem>>, vector<1x128xf32>
    %198 = vector.broadcast %197 : vector<1x128xf32> to vector<24x128xf32>
    %199 = arith.addf %196, %198 : vector<24x128xf32>
    %200 = vector.broadcast %145 : f32 to vector<24x128xf32>
    %201 = arith.mulf %200, %199 : vector<24x128xf32>
    %202 = arith.addf %149, %201 : vector<24x128xf32>
    %203 = vector.shape_cast %202 : vector<24x128xf32> to vector<1x24x128xf32>
    %c0_84 = arith.constant 0 : index
    %c0_85 = arith.constant 0 : index
    %c0_86 = arith.constant 0 : index
    %204 = vector.load %arg19[%c0_84, %c0_85, %c0_86] : memref<1x24x128xf32, #tpu.memory_space<vmem>>, vector<1x24x128xf32>
    tpu.vector_store %arg19[%c0_84, %c0_85, %c0_86], %203 {strides = array<i32>} : memref<1x24x128xf32, #tpu.memory_space<vmem>>, vector<1x24x128xf32>,
    return
  }
  func.func @transform_0(%arg0: i32) -> (i32, i32, i32) {
    %c0_i32 = arith.constant 0 : i32
    %c0_i32_0 = arith.constant 0 : i32
    %c0_i32_1 = arith.constant 0 : i32
    return %arg0, %c0_i32, %c0_i32_0 : i32, i32, i32
  }
  func.func @transform_1(%arg0: i32) -> (i32, i32, i32) {
    %c0_i32 = arith.constant 0 : i32
    %c0_i32_0 = arith.constant 0 : i32
    %c0_i32_1 = arith.constant 0 : i32
    return %arg0, %c0_i32, %c0_i32_0 : i32, i32, i32
  }
  func.func @transform_2(%arg0: i32) -> (i32, i32) {
    %c0_i32 = arith.constant 0 : i32
    %c0_i32_0 = arith.constant 0 : i32
    %c0_i32_1 = arith.constant 0 : i32
    return %c0_i32, %c0_i32_0 : i32, i32
  }
  func.func @transform_3(%arg0: i32) -> (i32, i32) {
    %c0_i32 = arith.constant 0 : i32
    %c0_i32_0 = arith.constant 0 : i32
    %c0_i32_1 = arith.constant 0 : i32
    return %c0_i32, %c0_i32_0 : i32, i32
  }
  func.func @transform_4(%arg0: i32) -> (i32, i32) {
    %c0_i32 = arith.constant 0 : i32
    %c0_i32_0 = arith.constant 0 : i32
    %c0_i32_1 = arith.constant 0 : i32
    return %c0_i32, %c0_i32_0 : i32, i32
  }
  func.func @transform_5(%arg0: i32) -> (i32, i32) {
    %c0_i32 = arith.constant 0 : i32
    %c0_i32_0 = arith.constant 0 : i32
    %c0_i32_1 = arith.constant 0 : i32
    return %c0_i32, %c0_i32_0 : i32, i32
  }
  func.func @transform_6(%arg0: i32) -> (i32, i32) {
    %c0_i32 = arith.constant 0 : i32
    %c0_i32_0 = arith.constant 0 : i32
    %c0_i32_1 = arith.constant 0 : i32
    return %c0_i32, %c0_i32_0 : i32, i32
  }
  func.func @transform_7(%arg0: i32) -> (i32, i32) {
    %c0_i32 = arith.constant 0 : i32
    %c0_i32_0 = arith.constant 0 : i32
    %c0_i32_1 = arith.constant 0 : i32
    return %c0_i32, %c0_i32_0 : i32, i32
  }
  func.func @transform_8(%arg0: i32) -> (i32, i32) {
    %c0_i32 = arith.constant 0 : i32
    %c0_i32_0 = arith.constant 0 : i32
    %c0_i32_1 = arith.constant 0 : i32
    return %c0_i32, %c0_i32_0 : i32, i32
  }
  func.func @transform_9(%arg0: i32) -> (i32, i32, i32) {
    %c0_i32 = arith.constant 0 : i32
    %c0_i32_0 = arith.constant 0 : i32
    %c0_i32_1 = arith.constant 0 : i32
    %c0_i32_2 = arith.constant 0 : i32
    return %c0_i32, %c0_i32_0, %c0_i32_1 : i32, i32, i32
  }
  func.func @transform_10(%arg0: i32) -> (i32, i32) {
    %c0_i32 = arith.constant 0 : i32
    %c0_i32_0 = arith.constant 0 : i32
    %c0_i32_1 = arith.constant 0 : i32
    return %c0_i32, %c0_i32_0 : i32, i32
  }
  func.func @transform_11(%arg0: i32) -> (i32, i32) {
    %c0_i32 = arith.constant 0 : i32
    %c0_i32_0 = arith.constant 0 : i32
    %c0_i32_1 = arith.constant 0 : i32
    return %c0_i32, %c0_i32_0 : i32, i32
  }
  func.func @transform_12(%arg0: i32) -> (i32, i32) {
    %c0_i32 = arith.constant 0 : i32
    %c0_i32_0 = arith.constant 0 : i32
    %c0_i32_1 = arith.constant 0 : i32
    return %c0_i32, %c0_i32_0 : i32, i32
  }
  func.func @transform_13(%arg0: i32) -> (i32, i32) {
    %c0_i32 = arith.constant 0 : i32
    %c0_i32_0 = arith.constant 0 : i32
    %c0_i32_1 = arith.constant 0 : i32
    return %c0_i32, %c0_i32_0 : i32, i32
  }
  func.func @transform_14(%arg0: i32) -> (i32, i32) {
    %c0_i32 = arith.constant 0 : i32
    %c0_i32_0 = arith.constant 0 : i32
    %c0_i32_1 = arith.constant 0 : i32
    return %c0_i32, %c0_i32_0 : i32, i32
  }
  func.func @transform_15(%arg0: i32) -> (i32, i32) {
    %c0_i32 = arith.constant 0 : i32
    %c0_i32_0 = arith.constant 0 : i32
    %c0_i32_1 = arith.constant 0 : i32
    return %c0_i32, %c0_i32_0 : i32, i32
  }
  func.func @transform_16(%arg0: i32) -> (i32, i32) {
    %c0_i32 = arith.constant 0 : i32
    %c0_i32_0 = arith.constant 0 : i32
    %c0_i32_1 = arith.constant 0 : i32
    return %c0_i32, %c0_i32_0 : i32, i32
  }
  func.func @transform_17(%arg0: i32) -> i32 {
    %c0_i32 = arith.constant 0 : i32
    %c0_i32_0 = arith.constant 0 : i32
    return %c0_i32 : i32
  }
  func.func @transform_18(%arg0: i32) -> (i32, i32, i32) {
    %c0_i32 = arith.constant 0 : i32
    %c0_i32_0 = arith.constant 0 : i32
    %c0_i32_1 = arith.constant 0 : i32
    return %arg0, %c0_i32, %c0_i32_0 : i32, i32, i32
  }
}

</mosaic_0001>

<bundles_post_ra>
// kernel: tpu_custom_call.1
= control target key start
LH: loop header
LB: loop body
LE: loop exit
PB: predicated region body
PF: predicated region fallthrough
CT: control target
= control target key end

     0   :  { %s5719_s0 = inlined_call_operand.hbm [shape: f32[2,24,128], index: 0, kind: input, shape index: {}]   ;;  %s5720_s1 = inlined_call_operand.hbm [shape: f32[2,8,64], index: 1, kind: input, shape index: {}]   ;;  %s5721_s2 = inlined_call_operand.hbm [shape: bf16[64,128], index: 2, kind: input, shape index: {}]   ;;  %s5722_s3 = inlined_call_operand.vmem [shape: f32[1,128], index: 3, kind: input, shape index: {}]   ;;  %s5723_s4 = inlined_call_operand.vmem [shape: f32[1,128], index: 4, kind: input, shape index: {}]   ;;  %s5724_s5 = inlined_call_operand.vmem [shape: f32[1,128], index: 5, kind: input, shape index: {}]   ;;  %s5725_s6 = inlined_call_operand.hbm [shape: bf16[128,128], index: 6, kind: input, shape index: {}]   ;;  %s5726_s7 = inlined_call_operand.hbm [shape: bf16[128,128], index: 7, kind: input, shape index: {}]   ;;  %s5727_s8 = inlined_call_operand.hbm [shape: bf16[128,128], index: 8, kind: input, shape index: {}]   ;;  %s5728_s9 = inlined_call_operand.hbm [shape: bf16[4,32,128], index: 9, kind: input, shape index: {}]   ;;  %s5729_s10 = inlined_call_operand.vmem [shape: f32[1,128], index: 10, kind: input, shape index: {}]   ;;  %s5730_s11 = inlined_call_operand.vmem [shape: f32[1,128], index: 11, kind: input, shape index: {}]   ;;  %s5731_s12 = inlined_call_operand.vmem [shape: f32[1,128], index: 12, kind: input, shape index: {}]   ;;  %s5732_s13 = inlined_call_operand.hbm [shape: bf16[128,1024], index: 13, kind: input, shape index: {}]   ;;  %s5733_s14 = inlined_call_operand.vmem [shape: f32[1,1024], index: 14, kind: input, shape index: {}]   ;;  %s5734_s15 = inlined_call_operand.hbm [shape: bf16[512,128], index: 15, kind: input, shape index: {}]   ;;  %s5735_s16 = inlined_call_operand.vmem [shape: f32[1,128], index: 16, kind: input, shape index: {}]   ;;  %s5736_s17 = inlined_call_operand.vmem [shape: f32[2], index: 17, kind: input, shape index: {}]   ;;  %s5737_s18 = inlined_call_operand.hbm [shape: f32[2,24,128], index: 18, kind: output, shape index: {}]  }
   0x1   :  { %5752 = sst [smem:[#allocation28_spill]] %s5719_s0 }
   0x2   :  { %5753 = sst [smem:[#allocation29_spill]] %s5720_s1 }
   0x3   :  { %5754 = sst [smem:[#allocation30_spill]] %s5721_s2 }
   0x4   :  { %5755 = sst [smem:[#allocation31_spill]] %s5723_s4 }
   0x5   :  { %5756 = sst [smem:[#allocation32_spill]] %s5724_s5 }
   0x6   :  { %5757 = sst [smem:[#allocation33_spill]] %s5725_s6 }
   0x7   :  { %5758 = sst [smem:[#allocation34_spill]] %s5726_s7 }
   0x8   :  { %5759 = sst [smem:[#allocation35_spill]] %s5727_s8 }
   0x9   :  { %5760 = sst [smem:[#allocation36_spill]] %s5728_s9 }
   0xa   :  { %5761 = sst [smem:[#allocation37_spill]] %s5729_s10 }
   0xb   :  { %5762 = sst [smem:[#allocation38_spill]] %s5730_s11 }
   0xc   :  { %5763 = sst [smem:[#allocation39_spill]] %s5731_s12 }
   0xd   :  { %5764 = sst [smem:[#allocation40_spill]] %s5732_s13 }
   0xe   :  { %5765 = sst [smem:[#allocation41_spill]] %s5733_s14 }
   0xf   :  { %5766 = sst [smem:[#allocation42_spill]] %s5734_s15 }
  0x10   :  { %5767 = sst [smem:[#allocation43_spill]] %s5735_s16 }
  0x11   :  { %5768 = sst [smem:[#allocation44_spill]] %s5737_s18 }
  0x12   :  { %23 = vsyncpa [#allocation3], 0 }
  0x13   :  { %25 = vsyncpa [#allocation3 + $0x1], 0 }
  0x14   :  { %26 = vsyncpa [#allocation7], 0 }
  0x15   :  { %28 = vsyncpa [#allocation7 + $0x1], 0 }
  0x16   :  { %29 = vsyncpa [#allocation10], 0 }
  0x17   :  { %30 = vsyncpa [#allocation13], 0 }
  0x18   :  { %31 = vsyncpa [#allocation16], 0 }
  0x19   :  { %32 = vsyncpa [#allocation5], 0 }
  0x1a   :  { %33 = vsyncpa [#allocation4], 0 }
  0x1b   :  { %35 = vsyncpa [#allocation4 + $0x1], 0  ;;  %s4877_s27 = smov 0   ;;  %s4879_s28 = smov 0  }
  0x1c   :  { %s4881_s29 = smov 0   ;;  %s4883_s30 = smov 0  }
  0x1d LB: > { %s4757_s0 = smov [#allocation8]   ;;  %s4898_s1 = sadd.s32 4294967295, %s4755_s30   ;;  %s4755_s30 = sphi %s4883_s30, %s5815_s30   ;;  %s4751_s29 = sphi %s4881_s29, %s5814_s29   ;;  %s4747_s28 = sphi %s4879_s28, %s5813_s28   ;;  %s4743_s27 = sphi %s4877_s27, %s5812_s27  }
  0x1e   : > { %s472_s19 = sshll.u32 %s4757_s0, 4  ;;  %p3581_p0 = scmp.ge.s32.totalorder %s4755_s30, 1  ;;  %s4903_s19 = int_to_ptr.vmem [resolvable:$true] %s472_s19 }
  0x1f   : > { %p5742_p1 = scmp.eq.s32.totalorder %s4898_s1, 0  ;;  %p460_p2 = scmp.lt.s32.totalorder %s4755_s30, 3 }
  0x20   : > { %s4758_s21 = smov [#allocation9]   ;;  %s4759_s23 = smov [#allocation12]  }
  0x21   : > { %p4905_p3 = pnand %p3581_p0, %p460_p2  ;;  %s494_s22 = sshll.u32 %s4758_s21, 4  ;;  %s4918_s22 = int_to_ptr.vmem [resolvable:$true] %s494_s22 }
  0x22   : > { %s520_s24 = sshll.u32 %s4759_s23, 4  ;;  %s5771_s0 = sld [smem:[#allocation30_spill]]  ;;  %s4920_s24 = int_to_ptr.vmem [resolvable:$true] %s520_s24 }
  0x23   : > { %s5769_s20 = scalar_select %p4905_p3, 1, 0 }
  0x24   : > { %p4129_p5 = pneg %p4905_p3 }
  0x26   : > { %p4914_p6 = pnand %p4129_p5, %p5742_p1 }
  0x28   : > { %s4394_s18 = scalar_lea.hbm %s5771_s0, 512  ;;  %p4930_p8 = pneg %p4914_p6 }
  0x29   : > { %p4395_p7 = scmp.ne.s32.totalorder %s5771_s0, %s4394_s18  ;;  %p4401_p11 = scmp.lt.u32.totalorder %s4394_s18, %s5771_s0 }
  0x2b   : > { %p4397_p9 = pnand %p4930_p8, %p4395_p7 }
  0x2d   : > { %p4398_p10 = pneg %p4397_p9 }
  0x2f   : > { %p4403_p12 = pnand %p4401_p11, %p4398_p10 }
  0x31   : > { %4406 = shalt.err (!%p4403_p12)
}
  0x32   : > { %s4407_s14 = scalar_lea.vmem %s4903_s19, 512  ;;  %p4415_p5 = scmp.lt.s32.totalorder %s4903_s19, %s4903_s19 }
  0x33   : > { %p4408_p13 = scmp.ne.s32.totalorder %s4903_s19, %s4407_s14  ;;  %p4416_p4 = scmp.lt.s32.totalorder %s4407_s14, %s4407_s14 }
  0x35   : > { %p4410_p0 = pnand %p4408_p13, %p4930_p8  ;;  %p4417_p7 = por %p4416_p4, %p4415_p5 }
  0x37   : > { %p4411_p2 = pneg %p4410_p0 }
  0x39   : > { %p4418_p9 = pnand %p4417_p7, %p4411_p2 }
  0x3b   : > { %4421 = shalt.err (!%p4418_p9)
}
  0x3c   : > { %s5744_s16 = smov 64   ;;  %s5746_s12 = smov 4  }
  0x3d   : > { %4132 = dma.hbm_to_vmem [thread:$0]  (!%p4914_p6), %s5771_s0, 512, %s4903_s19, [#allocation7], %s5744_s16, %s5744_s16, %s5746_s12  }
  0x3e   : > { %s5773_s6 = sld [smem:[#allocation33_spill]] }
  0x44   : > { %s4422_s14 = scalar_lea.hbm %s5773_s6, 1024 }
  0x45   : > { %p4423_p4 = scmp.ne.s32.totalorder %s5773_s6, %s4422_s14  ;;  %p4429_p12 = scmp.lt.u32.totalorder %s4422_s14, %s5773_s6 }
  0x47   : > { %p4425_p10 = pnand %p4423_p4, %p4930_p8 }
  0x49   : > { %p4426_p11 = pneg %p4425_p10 }
  0x4b   : > { %p4431_p13 = pnand %p4429_p12, %p4426_p11 }
  0x4d   : > { %4434 = shalt.err (!%p4431_p13)
}
  0x4e   : > { %s4435_s19 = scalar_lea.vmem %s4918_s22, 1024  ;;  %p4443_p7 = scmp.lt.s32.totalorder %s4918_s22, %s4918_s22 }
  0x4f   : > { %p4436_p0 = scmp.ne.s32.totalorder %s4918_s22, %s4435_s19  ;;  %p4444_p9 = scmp.lt.s32.totalorder %s4435_s19, %s4435_s19 }
  0x51   : > { %p4438_p2 = pnand %p4436_p0, %p4930_p8  ;;  %p4445_p4 = por %p4444_p9, %p4443_p7 }
  0x53   : > { %p4439_p5 = pneg %p4438_p2 }
  0x55   : > { %p4446_p10 = pnand %p4445_p4, %p4439_p5 }
  0x57   : > { %4449 = shalt.err (!%p4446_p10)
}
  0x58   : > { %4135 = dma.hbm_to_vmem [thread:$0]  (!%p4914_p6), %s5773_s6, 1024, %s4918_s22, [#allocation10], %s5744_s16, %s5744_s16, %s5746_s12  }
  0x59   : > { %s5774_s8 = sld [smem:[#allocation35_spill]] }
  0x5f   : > { %s4450_s18 = scalar_lea.hbm %s5774_s8, 1024 }
  0x60   : > { %p4451_p11 = scmp.ne.s32.totalorder %s5774_s8, %s4450_s18  ;;  %p4457_p0 = scmp.lt.u32.totalorder %s4450_s18, %s5774_s8 }
  0x62   : > { %p4453_p12 = pnand %p4451_p11, %p4930_p8 }
  0x64   : > { %p4454_p13 = pneg %p4453_p12 }
  0x66   : > { %p4459_p2 = pnand %p4457_p0, %p4454_p13 }
  0x68   : > { %4462 = shalt.err (!%p4459_p2)
}
  0x69   : > { %s4463_s22 = scalar_lea.vmem %s4920_s24, 1024  ;;  %p4471_p4 = scmp.lt.s32.totalorder %s4920_s24, %s4920_s24 }
  0x6a   : > { %p4464_p5 = scmp.ne.s32.totalorder %s4920_s24, %s4463_s22  ;;  %p4472_p10 = scmp.lt.s32.totalorder %s4463_s22, %s4463_s22 }
  0x6c   : > { %p4466_p7 = pnand %p4464_p5, %p4930_p8  ;;  %p4473_p11 = por %p4472_p10, %p4471_p4 }
  0x6e   : > { %p4467_p9 = pneg %p4466_p7 }
  0x70   : > { %p4474_p12 = pnand %p4473_p11, %p4467_p9 }
  0x72   : > { %4477 = shalt.err (!%p4474_p12)
}
  0x73   : > { %4141 = dma.hbm_to_vmem [thread:$0]  (!%p4914_p6), %s5774_s8, 1024, %s4920_s24, [#allocation13], %s5744_s16, %s5744_s16, %s5746_s12  }
  0x74   : > { %s4762_s5 = smov [#allocation15]   ;;  %s5775_s13 = sld [smem:[#allocation40_spill]] }
  0x75   : > { %s555_s10 = sshll.u32 %s4762_s5, 4  ;;  %s556_s10 = int_to_ptr.vmem [resolvable:$true] %s555_s10 }
  0x7a   : > { %s4478_s25 = scalar_lea.hbm %s5775_s13, 8192 }
  0x7b   : > { %p4479_p13 = scmp.ne.s32.totalorder %s5775_s13, %s4478_s25  ;;  %p4485_p5 = scmp.lt.u32.totalorder %s4478_s25, %s5775_s13 }
  0x7d   : > { %p4481_p0 = pnand %p4479_p13, %p4930_p8 }
  0x7f   : > { %p4482_p2 = pneg %p4481_p0 }
  0x81   : > { %p4487_p7 = pnand %p4485_p5, %p4482_p2 }
  0x83   : > { %4490 = shalt.err (!%p4487_p7)
}
  0x84   : > { %s4491_s24 = scalar_lea.vmem %s556_s10, 8192  ;;  %p4499_p11 = scmp.lt.s32.totalorder %s556_s10, %s556_s10 }
  0x85   : > { %p4492_p9 = scmp.ne.s32.totalorder %s556_s10, %s4491_s24  ;;  %p4500_p12 = scmp.lt.s32.totalorder %s4491_s24, %s4491_s24 }
  0x87   : > { %p4494_p4 = pnand %p4492_p9, %p4930_p8  ;;  %p4501_p1 = por %p4500_p12, %p4499_p11 }
  0x89   : > { %p4495_p10 = pneg %p4494_p4 }
  0x8b   : > { %p4502_p3 = pnand %p4501_p1, %p4495_p10 }
  0x8d   : > { %4505 = shalt.err (!%p4502_p3)
}
  0x8e   : > { %s4763_s19 = smov 512   ;;  %s4764_s4 = smov 32  }
  0x8f   : > { %4147 = dma.hbm_to_vmem [thread:$0]  (!%p4914_p6), %s5775_s13, 8192, %s556_s10, [#allocation16], %s4763_s19, %s4763_s19, %s4764_s4  }
  0x90   : > { %s4765_s18 = smov [#allocation11]   ;;  %s4766_s26 = smov [#allocation14]  }
  0x91   : > { %s507_s25 = sshll.u32 %s4765_s18, 4  ;;  %s533_s23 = sshll.u32 %s4766_s26, 4  ;;  %s508_s25 = int_to_ptr.vmem [resolvable:$true] %s507_s25  ;;  %s5024_s23 = int_to_ptr.vmem [resolvable:$true] %s533_s23 }
  0x92   : > { %s5776_s7 = sld [smem:[#allocation34_spill]] }
  0x98   : > { %s4506_s24 = scalar_lea.hbm %s5776_s7, 1024 }
  0x99   : > { %p4507_p1 = scmp.ne.s32.totalorder %s5776_s7, %s4506_s24  ;;  %p4513_p0 = scmp.lt.u32.totalorder %s4506_s24, %s5776_s7 }
  0x9b   : > { %p4509_p3 = pnand %p4507_p1, %p4930_p8 }
  0x9d   : > { %p4510_p13 = pneg %p4509_p3 }
  0x9f   : > { %p4515_p2 = pnand %p4513_p0, %p4510_p13 }
  0xa1   : > { %4518 = shalt.err (!%p4515_p2)
}
  0xa2   : > { %s4519_s19 = scalar_lea.vmem %s508_s25, 1024  ;;  %p4527_p4 = scmp.lt.s32.totalorder %s508_s25, %s508_s25 }
  0xa3   : > { %p4520_p5 = scmp.ne.s32.totalorder %s508_s25, %s4519_s19  ;;  %p4528_p10 = scmp.lt.s32.totalorder %s4519_s19, %s4519_s19 }
  0xa5   : > { %p4522_p7 = pnand %p4520_p5, %p4930_p8  ;;  %p4529_p11 = por %p4528_p10, %p4527_p4 }
  0xa7   : > { %p4523_p9 = pneg %p4522_p7 }
  0xa9   : > { %p4530_p12 = pnand %p4529_p11, %p4523_p9 }
  0xab   : > { %4533 = shalt.err (!%p4530_p12)
}
  0xac   : > { %s5777_s16 = smov 4   ;;  %s5778_s12 = smov 64  }
  0xad   : > { %4138 = dma.hbm_to_vmem [thread:$0]  (!%p4914_p6), %s5776_s7, 1024, %s508_s25, [#allocation10], %s5778_s12, %s5778_s12, %s5777_s16  }
  0xae   : > { %s5779_s9 = sld [smem:[#allocation36_spill]] }
  0xb4   : > { %s4534_s14 = scalar_lea.hbm %s5779_s9, 1024 }
  0xb5   : > { %p4535_p1 = scmp.ne.s32.totalorder %s5779_s9, %s4534_s14  ;;  %p4541_p0 = scmp.lt.u32.totalorder %s4534_s14, %s5779_s9 }
  0xb7   : > { %p4537_p3 = pnand %p4535_p1, %p4930_p8 }
  0xb9   : > { %p4538_p13 = pneg %p4537_p3 }
  0xbb   : > { %p4543_p2 = pnand %p4541_p0, %p4538_p13 }
  0xbd   : > { %4546 = shalt.err (!%p4543_p2)
}
  0xbe   : > { %s4547_s25 = scalar_lea.vmem %s5024_s23, 1024  ;;  %p4555_p4 = scmp.lt.s32.totalorder %s5024_s23, %s5024_s23 }
  0xbf   : > { %p4548_p5 = scmp.ne.s32.totalorder %s5024_s23, %s4547_s25  ;;  %p4556_p10 = scmp.lt.s32.totalorder %s4547_s25, %s4547_s25 }
  0xc1   : > { %p4550_p7 = pnand %p4548_p5, %p4930_p8  ;;  %p4557_p11 = por %p4556_p10, %p4555_p4 }
  0xc3   : > { %p4551_p9 = pneg %p4550_p7 }
  0xc5   : > { %p4558_p12 = pnand %p4557_p11, %p4551_p9 }
  0xc7   : > { %4561 = shalt.err (!%p4558_p12)
}
  0xc8   : > { %4144 = dma.hbm_to_vmem [thread:$0]  (!%p4914_p6), %s5779_s9, 1024, %s5024_s23, [#allocation13], %s5778_s12, %s5778_s12, %s5777_s16  }
  0xc9   : > { %s588_s26 = sshll.u32 %s5736_s17, 4  ;;  %s4767_s14 = smov [#allocation17]   ;;  %s5076_s26 = int_to_ptr.vmem [resolvable:$true] %s588_s26 }
  0xca   : > { %s571_s22 = sshll.u32 %s4767_s14, 4  ;;  %s5780_s15 = sld [smem:[#allocation42_spill]]  ;;  %s572_s22 = int_to_ptr.vmem [resolvable:$true] %s571_s22 }
  0xd0   : > { %s4562_s10 = scalar_lea.hbm %s5780_s15, 4096 }
  0xd1   : > { %p4563_p1 = scmp.ne.s32.totalorder %s5780_s15, %s4562_s10  ;;  %p4569_p0 = scmp.lt.u32.totalorder %s4562_s10, %s5780_s15 }
  0xd3   : > { %p4565_p3 = pnand %p4563_p1, %p4930_p8 }
  0xd5   : > { %p4566_p13 = pneg %p4565_p3 }
  0xd7   : > { %p4571_p2 = pnand %p4569_p0, %p4566_p13 }
  0xd9   : > { %4574 = shalt.err (!%p4571_p2)
}
  0xda   : > { %s4575_s4 = scalar_lea.vmem %s572_s22, 4096  ;;  %p4583_p4 = scmp.lt.s32.totalorder %s572_s22, %s572_s22 }
  0xdb   : > { %p4576_p5 = scmp.ne.s32.totalorder %s572_s22, %s4575_s4  ;;  %p4584_p10 = scmp.lt.s32.totalorder %s4575_s4, %s4575_s4 }
  0xdd   : > { %p4578_p7 = pnand %p4576_p5, %p4930_p8  ;;  %p4585_p11 = por %p4584_p10, %p4583_p4 }
  0xdf   : > { %p4579_p9 = pneg %p4578_p7 }
  0xe1   : > { %p4586_p12 = pnand %p4585_p11, %p4579_p9 }
  0xe3   : > { %4589 = shalt.err (!%p4586_p12)
}
  0xe4   : > { %4150 = dma.hbm_to_vmem [thread:$0]  (!%p4914_p6), %s5780_s15, 4096, %s572_s22, [#allocation16], %s5778_s12, %s5778_s12, %s5777_s16  }
  0xe5   : > { %s4590_s18 = scalar_lea.vmem %s5076_s26, 16  ;;  %p4598_p0 = scmp.lt.s32.totalorder %s5076_s26, %s5076_s26 }
  0xe6   : > { %p4591_p1 = scmp.ne.s32.totalorder %s5076_s26, %s4590_s18  ;;  %p4599_p2 = scmp.lt.s32.totalorder %s4590_s18, %s4590_s18 }
  0xe8   : > { %p4593_p3 = pnand %p4591_p1, %p4930_p8  ;;  %p4600_p5 = por %p4599_p2, %p4598_p0 }
  0xea   : > { %p4594_p13 = pneg %p4593_p3 }
  0xec   : > { %p4601_p7 = pnand %p4600_p5, %p4594_p13 }
  0xee   : > { %4604 = shalt.err (!%p4601_p7)
}
  0xef   : > { %s4768_s14 = smov [#allocation18]   ;;  %s3580_s21 = sadd.s32 4294967294, %s4755_s30  }
  0xf0   : > { %4153 = dma.vmem_to_smem (!%p4914_p6), %s5076_s26, 16, %s4768_s14, [#allocation5]  }
  0xf1   : > { %s5110_s16 = sadd.s32 1, %s4755_s30   ;;  %s48_s12 = sadd.s32 1, %s4751_s29 }
  0xf2   : > { %s45_s2 = ssub.s32 %s4755_s30, %s5110_s16  ;;  %p55_p9 = scmp.ne.s32.totalorder %s4751_s29, %s4747_s28 }
  0xf3   : > { %p46_p8 = scmp.eq.s32.totalorder %s45_s2, 0  ;;  %p56_p4 = scmp.eq.s32.totalorder %s4755_s30, 0 }
  0xf4   : > { %p61_p10 = scmp.ne.s32.totalorder %s4747_s28, %s4743_s27  ;;  %p5781_p12 = scmp.eq.s32.totalorder %s4898_s1, 0 }
  0xf5   : > { %s5121_s22 = scalar_select %p46_p8, %s4751_s29, %s48_s12  }
  0xf6   : > { %p57_p11 = por %p56_p4, %p55_p9  ;;  %p5125_p1 = por %p5781_p12, %p61_p10 }
  0xf7   : > { %p447_p6 = scmp.eq.s32.totalorder %s4898_s1, 1  ;;  %p453_p3 = scmp.eq.s32.totalorder %s3580_s21, 1 }
  0xf8   : > { %s5782_s24 = scalar_select %p5125_p1, 1, 0 }
  0xf9   : > { %p4173_p13 = scmp.lt.s32.totalorder %s4755_s30, 2  ;;  %s5132_s26 = sand.u32 1, %s4751_s29  }
  0xfa   : > { %p5134_p0 = por %p447_p6, %p55_p9  ;;  %p5138_p2 = por %p453_p3, %p61_p10 }
  0xfb   : > { %s4087_s25 = smul.u32 24, %s5132_s26  ;;  %p5144_p5 = pnand %p4173_p13, %p57_p11 }
  0xfc   : > { %s5783_s5 = scalar_select %p5134_p0, 1, 0 }
  0xfd   : > { %s5784_s10 = scalar_select %p5138_p2, 1, 0 }
  0xfe   : > { %s4088_s23 = smul.u32 384, %s4755_s30  ;;  %s5786_s11 = sld [smem:[#allocation28_spill]] }
  0xff   : > { %s603_s14 = scalar_lea.vmem [#allocation2], %s4087_s25  ;;  %s600_s12 = scalar_lea.sflag [#allocation3], %s5132_s26 }
 0x100   : > { %s610_s21 = sshll.u32 %s603_s14, 4  ;;  %p4607_p8 = pneg %p5144_p5  ;;  %s5153_s21 = int_to_ptr.vmem [resolvable:$true] %s610_s21 }
 0x104   : > { %s5151_s18 = scalar_lea.hbm %s5786_s11, %s4088_s23  ;;  %s4610_s0 = scalar_lea.hbm %s5786_s11, 768 }
 0x105   : > { %s4605_s6 = scalar_lea.hbm %s5151_s18, 384  ;;  %p4611_p10 = scmp.lt.u32.totalorder %s5151_s18, %s5786_s11 }
 0x106   : > { %p4606_p7 = scmp.ne.s32.totalorder %s5151_s18, %s4605_s6  ;;  %p4612_p11 = scmp.lt.u32.totalorder %s4610_s0, %s4605_s6 }
 0x107   : > { %p4614_p6 = scmp.lt.u32.totalorder %s4605_s6, %s5151_s18 }
 0x108   : > { %p4608_p9 = pnand %p4607_p8, %p4606_p7  ;;  %p4613_p12 = por %p4612_p11, %p4611_p10 }
 0x10a   : > { %p4609_p4 = pneg %p4608_p9  ;;  %p4615_p3 = por %p4614_p6, %p4613_p12 }
 0x10c   : > { %p4616_p13 = pnand %p4615_p3, %p4609_p4 }
 0x10e   : > { %4619 = shalt.err (!%p4616_p13)
}
 0x10f   : > { %s4620_s25 = scalar_lea.vmem %s5153_s21, 384  ;;  %s4769_s14 = smov [#allocation2]  }
 0x110   : > { %p4621_p7 = scmp.ne.s32.totalorder %s5153_s21, %s4620_s25  ;;  %s4625_s23 = sshll.u32 %s4769_s14, 4  ;;  %s4626_s23 = int_to_ptr.vmem [resolvable:$false] %s4625_s23 }
 0x111   : > { %s4627_s7 = scalar_lea.vmem %s4626_s23, 768  ;;  %p4628_p0 = scmp.lt.s32.totalorder %s5153_s21, %s4626_s23 }
 0x112   : > { %p4623_p9 = pnand %p4621_p7, %p4607_p8  ;;  %p4629_p10 = scmp.lt.s32.totalorder %s4627_s7, %s4620_s25 }
 0x114   : > { %p4624_p2 = pneg %p4623_p9  ;;  %p4630_p11 = por %p4629_p10, %p4628_p0 }
 0x116   : > { %p4631_p12 = pnand %p4630_p11, %p4624_p2 }
 0x118   : > { %4634 = shalt.err (!%p4631_p12)
}
 0x119   : > { %s4770_s6 = smov 128   ;;  %s4771_s8 = smov 8  }
 0x11a   : > { %4157 = dma.hbm_to_vmem [thread:$0]  (!%p5144_p5), %s5151_s18, 384, %s5153_s21, %s600_s12, %s4770_s6, %s4770_s6, %s4771_s8  }
 0x11b   : > { %s3592_s4 = sshll.u32 %s5132_s26, 3  ;;  %s3593_s0 = sshll.u32 %s4755_s30, 7 }
 0x11c   : > { %s5787_s23 = sld [smem:[#allocation29_spill]]  ;;  %s624_s2 = scalar_lea.vmem [#allocation6], %s3592_s4 }
 0x11d   : > { %s631_s9 = sshll.u32 %s624_s2, 4  ;;  %s5788_s11 = sand.u32 1, %s4755_s30   ;;  %s632_s9 = int_to_ptr.vmem [resolvable:$true] %s631_s9 }
 0x11e   : > { %s621_s13 = scalar_lea.sflag [#allocation7], %s5788_s11 }
 0x122   : > { %s5189_s7 = scalar_lea.hbm %s5787_s23, %s3593_s0  ;;  %s4640_s21 = scalar_lea.hbm %s5787_s23, 256 }
 0x123   : > { %s4635_s15 = scalar_lea.hbm %s5189_s7, 128  ;;  %p4641_p6 = scmp.lt.u32.totalorder %s5189_s7, %s5787_s23 }
 0x124   : > { %p4636_p0 = scmp.ne.s32.totalorder %s5189_s7, %s4635_s15  ;;  %p4642_p3 = scmp.lt.u32.totalorder %s4640_s21, %s4635_s15 }
 0x125   : > { %p4644_p7 = scmp.lt.u32.totalorder %s4635_s15, %s5189_s7 }
 0x126   : > { %p4638_p2 = pnand %p4636_p0, %p4607_p8  ;;  %p4643_p13 = por %p4642_p3, %p4641_p6 }
 0x128   : > { %p4639_p4 = pneg %p4638_p2  ;;  %p4645_p9 = por %p4644_p7, %p4643_p13 }
 0x12a   : > { %p4646_p10 = pnand %p4645_p9, %p4639_p4 }
 0x12c   : > { %4649 = shalt.err (!%p4646_p10)
}
 0x12d   : > { %s4650_s11 = scalar_lea.vmem %s632_s9, 128  ;;  %s4772_s2 = smov [#allocation6]  }
 0x12e   : > { %p4651_p11 = scmp.ne.s32.totalorder %s632_s9, %s4650_s11  ;;  %s4655_s8 = sshll.u32 %s4772_s2, 4  ;;  %s4656_s8 = int_to_ptr.vmem [resolvable:$false] %s4655_s8 }
 0x12f   : > { %s4657_s4 = scalar_lea.vmem %s4656_s8, 256  ;;  %p4658_p2 = scmp.lt.s32.totalorder %s632_s9, %s4656_s8 }
 0x130   : > { %p4653_p12 = pnand %p4651_p11, %p4607_p8  ;;  %p4659_p1 = scmp.lt.s32.totalorder %s4657_s4, %s4650_s11 }
 0x132   : > { %p4654_p0 = pneg %p4653_p12  ;;  %p4660_p3 = por %p4659_p1, %p4658_p2 }
 0x134   : > { %p4661_p6 = pnand %p4660_p3, %p4654_p0 }
 0x136   : > { %4664 = shalt.err (!%p4661_p6)
}
 0x137   : > { %4160 = dma.hbm_to_vmem [thread:$0]  (!%p5144_p5), %s5189_s7, 128, %s632_s9, %s621_s13  }
 0x138   : > { %p5789_p4 = scmp.ne.s32.totalorder %s5769_s20, 0 }
 0x139   : > { %s5215_s15 = sand.u32 (!%p5789_p4), 1, %s4747_s28   ;;  %p5790_p1 = scmp.ne.s32.totalorder (!%p5789_p4), %s5782_s24, 0 }
 0x13a   : > { %640 = sbr.rel (%p5789_p4) target bundleno = 4046 (0xfce), region = 92  ;;  %s643_s14 = scalar_lea.sflag (!%p5789_p4), [#allocation3], %s5215_s15 }
 0x13b   : > { %s4089_s0 = smul.u32 (!%p5789_p4), 24, %s5215_s15 }
 0x13d   : > { %s5221_s25 = scalar_lea.vmem (!%p5789_p4), [#allocation2], %s4089_s0 }
 0x141   : > { %4710 = dma.done.wait (%p5790_p1), %s643_s14, 384  }
 0x142   : > { %4712 = vsyncadd (%p5790_p1), %s643_s14, 4294966912  ;;  %s651_s9 = sand.u32 1, %s4898_s1   ;;  %s3595_s13 = sshll.u32 %s5215_s15, 3 }
 0x143   : > { %s652_s20 = scalar_lea.sflag [#allocation7], %s651_s9  ;;  %s5229_s19 = scalar_lea.vmem [#allocation6], %s3595_s13 }
 0x144   : > { %4714 = dma.done.wait (%p5790_p1), %s652_s20, 128  }
 0x145   : > { %4716 = vsyncadd (%p5790_p1), %s652_s20, 4294967168  ;;  %p5791_p5 = scmp.eq.s32.totalorder %s4898_s1, 0 }
 0x147   : > { %4718 = dma.done.wait (%p5791_p5), [#allocation7], 512   ;;  %p5792_p8 = pmov %p5791_p5 }
 0x148   : > { %p5793_p13 = pmov %p5791_p5 }
 0x149   : > { %4720 = vsyncadd (%p5792_p8), [#allocation7], 4294966784 }
 0x14a   : > { %4722 = dma.done.wait (%p5793_p13), [#allocation10], 2048   ;;  %p5794_p7 = pmov %p5791_p5 }
 0x14b   : > { %p5795_p9 = pmov %p5791_p5 }
 0x14c   : > { %4724 = vsyncadd (%p5794_p7), [#allocation10], 4294965248 }
 0x14d   : > { %4726 = dma.done.wait (%p5795_p9), [#allocation13], 2048   ;;  %p5796_p10 = pmov %p5791_p5 }
 0x14e   : > { %p5797_p11 = pmov %p5791_p5 }
 0x14f   : > { %4728 = vsyncadd (%p5796_p10), [#allocation13], 4294965248 }
 0x150   : > { %4730 = dma.done.wait (%p5797_p11), [#allocation16], 12288   ;;  %p5798_p12 = pmov %p5791_p5 }
 0x151   : > { %p5799_p0 = pmov %p5791_p5 }
 0x152   : > { %4732 = vsyncadd (%p5798_p12), [#allocation16], 4294955008 }
 0x153   : > { %4734 = dma.done.wait (%p5799_p0), [#allocation5], 16   ;;  %p5800_p2 = pmov %p5799_p0 }
 0x155   : > { %4736 = vsyncadd (%p5800_p2), [#allocation5], 4294967280 }
 0x156   : > { %692 = sfence }
 0x157   : > { %v4237_v0 = vld [vmem:[#allocation8] sm:$0xff]   ;;  %v4773_v1 = vmov 0.0   ;;  %v4238_v2 = vld [vmem:[#allocation8 + $0x8] sm:$0xff]   ;;  %vm4774_vm0 = vmmov 0   ;;  %v4239_v3 = vld [vmem:[#allocation8 + $0x10] sm:$0xff]   ;;  %vm791_vm1 = vcmask 523264  }
 0x158   : > { %3911 = vmatprep.subr.bf16.mxu0 %v4773_v1  ;;  %3919 = vmatprep.mubr.msk.bf16.mxu0 %vm4774_vm0, %v4773_v1  ;;  %v747_v4 = vld [vmem:[%s5221_s25] sm:$0xff]  ;;  %v749_v5 = vld [vmem:[%s5221_s25 + $0x10] sm:$0xff]  ;;  %v748_v6 = vld [vmem:[%s5221_s25 + $0x8] sm:$0xff]  ;;  %s5801_s21 = sld [smem:[#allocation31_spill]]  ;;  %s5802_s11 = sld [smem:[#allocation32_spill]]  ;;  %vm1249_vm2 = vcmask 261120  }
 0x159   : > { %3912 = vmatpush3.bf16.msra.mxu0 %v4237_v0  ;;  %837 = vadd.xlane.f32.xlu0 %v747_v4  ;;  %v4240_v7 = vld [vmem:[#allocation8 + $0x18] sm:$0xff]   ;;  %v4241_v18 = vld [vmem:[#allocation9] sm:$0xff]   ;;  %v4242_v29 = vld [vmem:[#allocation9 + $0x8] sm:$0xff]   ;;  %s4775_s2 = smov 96   ;;  %s4776_s8 = smov 64  }
 0x15a   : > { %3913 = vmatprep.subr.bf16.mxu0 %v4773_v1  ;;  %841 = vadd.xlane.f32.xlu1 %v749_v5  ;;  %v750_v8 = vld [vmem:[%s5229_s19] sm:$0xff]  ;;  %v3604_v21 = vld [vmem:[%s5722_s3] ss:$0 sm:$0xff]  ;;  %v4246_v33 = vld [vmem:[#allocation9 + $0x28] sm:$0xff]   ;;  %s4777_s4 = smov 32   ;;  %s2201_s14 = sld [smem:[#allocation18]] }
 0x15b   : > { %v751_v9 = vpack.c.bf16 %v750_v8, %v750_v8  ;;  %3923 = vmatprep.subr.bf16.mxu1 %v4241_v18  ;;  %v4243_v30 = vld [vmem:[#allocation9 + $0x10] sm:$0xff]   ;;  %v4244_v31 = vld [vmem:[#allocation9 + $0x18] sm:$0xff]   ;;  %v4245_v32 = vld [vmem:[#allocation9 + $0x20] sm:$0xff]   ;;  %s5803_s20 = sld [smem:[#allocation37_spill]]  ;;  %s5804_s24 = sld [smem:[#allocation38_spill]] }
 0x15c   : > { %3924 = vmatpush3.bf16.msra.mxu1 %v4241_v18  ;;  %v4247_v34 = vld [vmem:[#allocation9 + $0x30] sm:$0xff]   ;;  %v4248_v35 = vld [vmem:[#allocation9 + $0x38] sm:$0xff]   ;;  %v4249_v36 = vld [vmem:[#allocation11] sm:$0xff]   ;;  %s5805_s18 = sld [smem:[#allocation39_spill]]  ;;  %s5806_s6 = sld [smem:[#allocation41_spill]] }
 0x15d   : > { %3914 = vmatpush3.bf16.msra.mxu0 %v4238_v2  ;;  %839 = vadd.xlane.f32.xlu0 %v748_v6  ;;  %v4250_v37 = vld [vmem:[#allocation12] sm:$0xff]   ;;  %v4251_v38 = vld [vmem:[#allocation11 + $0x8] sm:$0xff]   ;;  %v4253_v39 = vld [vmem:[#allocation11 + $0x10] sm:$0xff]   ;;  %s4090_s9 = smul.u32 384, %s4898_s1  ;;  %s5808_s19 = sld [smem:[#allocation44_spill]] }
 0x15e   : > { %3915 = vmatprep.subr.bf16.mxu0 %v4773_v1  ;;  %3925 = vmatprep.subr.bf16.mxu1 %v4242_v29  ;;  %v3610_v57 = vld [vmem:[%s5801_s21] ss:$0 sm:$0xff]  ;;  %v4255_v0 = vld [vmem:[#allocation11 + $0x18] sm:$0xff]   ;;  %v4259_v8 = vld [vmem:[#allocation11 + $0x28] sm:$0xff]   ;;  %p5809_p6 = scmp.ne.s32.totalorder %s5783_s5, 0  ;;  %s4779_s1 = smov [#allocation19]  }
 0x15f   : > { %v3611_v62 = vld [vmem:[%s5802_s11] ss:$0 sm:$0xff]  ;;  %s3669_s11 = sld [smem:[#allocation18 + $0x1]]  ;;  %s4669_s26 = sshll.u32 %s4779_s1, 4  ;;  %s4670_s26 = int_to_ptr.vmem [resolvable:$false] %s4669_s26 }
 0x160   : > { %3926 = vmatpush3.bf16.msra.mxu1 %v4242_v29 }
 0x161   : > { %3916 = vmatpush3.bf16.msra.mxu0 %v4239_v3  ;;  %3927 = vmatprep.subr.bf16.mxu1 %v4243_v30 }
 0x162   : > { %3917 = vmatprep.subr.bf16.mxu0 %v4773_v1 }
 0x164   : > { %3928 = vmatpush3.bf16.msra.mxu1 %v4243_v30 }
 0x165   : > { %3918 = vmatpush3.bf16.msra.mxu0 %v4240_v7  ;;  %3929 = vmatprep.subr.bf16.mxu1 %v4244_v31  ;;  %v4252_v7 = vld [vmem:[#allocation12 + $0x8] sm:$0xff]  }
 0x166   : > { %3943 = vmatprep.subr.bf16.mxu0 %v4249_v36 }
 0x168   : > { %3920 = vmatmul.mubr.msk.bf16.vlgmr.msra.gmra.mrb[0].mxu0 %vm791_vm1, %v751_v9  ;;  %3930 = vmatpush3.bf16.msra.mxu1 %v4244_v31  ;;  %v4254_v9 = vld [vmem:[#allocation12 + $0x10] sm:$0xff]  }
 0x169   : > { %3931 = vmatprep.subr.bf16.mxu1 %v4245_v32  ;;  %3944 = vmatpush3.bf16.msra.mxu0 %v4249_v36 }
 0x16a   : > { %3945 = vmatprep.subr.bf16.mxu0 %v4251_v38 }
 0x16c   : > { %3932 = vmatpush3.bf16.msra.mxu1 %v4245_v32 }
 0x16d   : > { %3933 = vmatprep.subr.bf16.mxu1 %v4246_v33  ;;  %3946 = vmatpush3.bf16.msra.mxu0 %v4251_v38 }
 0x16e   : > { %3947 = vmatprep.subr.bf16.mxu0 %v4253_v39 }
 0x170   : > { %3934 = vmatpush3.bf16.msra.mxu1 %v4246_v33 }
 0x171   : > { %3935 = vmatprep.subr.bf16.mxu1 %v4247_v34  ;;  %3948 = vmatpush3.bf16.msra.mxu0 %v4253_v39 }
 0x172   : > { %3949 = vmatprep.subr.bf16.mxu0 %v4255_v0 }
 0x174   : > { %3936 = vmatpush3.bf16.msra.mxu1 %v4247_v34 }
 0x175   : > { %3937 = vmatprep.subr.bf16.mxu1 %v4248_v35  ;;  %3950 = vmatpush3.bf16.msra.mxu0 %v4255_v0 }
 0x178   : > { %3938 = vmatpush3.bf16.msra.mxu1 %v4248_v35 }
 0x179   : > { %3963 = vmatprep.subr.bf16.mxu1 %v4250_v37 }
 0x1e6   : > { %v838_v10 = vpop.xlane.xlu0 %837 }
 0x1e7   : > { %v842_v11 = vpop.xlane.xlu1 %841  ;;  %v846_v12 = vmul.f32 0.0078125, %v838_v10  ;;  %v4261_v10 = vld [vmem:[#allocation11 + $0x30] sm:$0xff]  }
 0x1e8   : > { %v848_v13 = vmul.f32 0.0078125, %v842_v11  ;;  %v4256_v11 = vld [vmem:[#allocation12 + $0x18] sm:$0xff]  }
 0x1e9   : > { %v5259_v14 = vsub.f32 %v747_v4, %v846_v12  ;;  %v4263_v12 = vld [vmem:[#allocation11 + $0x38] sm:$0xff]  }
 0x1ea   : > { %v5261_v15 = vsub.f32 %v749_v5, %v848_v13  ;;  %v840_v19 = vpop.xlane.xlu0 %839  ;;  %v4257_v5 = vld [vmem:[#allocation11 + $0x20] sm:$0xff]  }
 0x1eb   : > { %v854_v16 = vmul.f32 %v5259_v14, %v5259_v14  ;;  %v847_v20 = vmul.f32 0.0078125, %v840_v19  ;;  %3951 = vmatprep.subr.bf16.mxu0 %v4257_v5  ;;  %v4258_v13 = vld [vmem:[#allocation12 + $0x20] sm:$0xff]  }
 0x1ec   : > { %v856_v17 = vmul.f32 %v5261_v15, %v5261_v15  ;;  %3952 = vmatpush3.bf16.msra.mxu0 %v4257_v5 }
 0x1ed   : > { %858 = vadd.xlane.f32.xlu0 %v854_v16  ;;  %v5270_v22 = vsub.f32 %v748_v6, %v847_v20  ;;  %3953 = vmatprep.subr.bf16.mxu0 %v4259_v8  ;;  %v4264_v16 = vld [vmem:[#allocation12 + $0x38] sm:$0xff]  }
 0x1ef   : > { %v855_v28 = vmul.f32 %v5270_v22, %v5270_v22 }
 0x1f0   : > { %3954 = vmatpush3.bf16.msra.mxu0 %v4259_v8 }
 0x1f1   : > { %862 = vadd.xlane.f32.xlu0 %v856_v17  ;;  %3955 = vmatprep.subr.bf16.mxu0 %v4261_v10 }
 0x1f4   : > { %3956 = vmatpush3.bf16.msra.mxu0 %v4261_v10 }
 0x1f5   : > { %3957 = vmatprep.subr.bf16.mxu0 %v4263_v12 }
 0x1f8   : > { %3958 = vmatpush3.bf16.msra.mxu0 %v4263_v12 }
 0x23b   : > { %v829_v23 = vpop.f32.mrb[0].mxu0 }
 0x23c   : > { %v830_v24 = vadd.f32 %v3604_v21, %v829_v23  ;;  %v3921_v25 = vpop.f32.mrb[1].mxu0 }
 0x23d   : > { %v832_v26 = vpop.f32.mrb[2].mxu0 }
 0x23e   : > { %v3922_v27 = vpop.f32.mrb[3].mxu0  ;;  %843 = vadd.xlane.f32.xlu1 %v830_v24 }
 0x242   : > { %860 = vadd.xlane.f32.xlu1 %v855_v28 }
 0x27a   : > { %v859_v40 = vpop.xlane.xlu0 %858 }
 0x27b   : > { %v866_v43 = vmul.f32 0.0078125, %v859_v40 }
 0x27d   : > { %v870_v45 = vadd.f32 1e-05, %v866_v43 }
 0x27e   : > { %v863_v41 = vpop.xlane.xlu0 %862 }
 0x27f   : > { %v868_v42 = vmul.f32 0.0078125, %v863_v41 }
 0x281   : > { %v872_v44 = vadd.f32 1e-05, %v868_v42 }
 0x283   : > { %4305 = vrsqrt.f32 %v872_v44 }
 0x284   : > { %4307 = vrsqrt.f32 %v870_v45 }
 0x28d   : > { %v4306_v53 = vpop.eup %4305 }
 0x28e   : > { %v4308_v54 = vpop.eup %4307  ;;  %v880_v55 = vmul.f32 %v4306_v53, %v5261_v15  ;;  %v4262_v15 = vld [vmem:[#allocation12 + $0x30] sm:$0xff]  }
 0x28f   : > { %v878_v56 = vmul.f32 %v4308_v54, %v5259_v14  ;;  %v4260_v14 = vld [vmem:[#allocation12 + $0x28] sm:$0xff]  }
 0x290   : > { %v890_v59 = vmul.f32 %v3610_v57, %v880_v55 }
 0x291   : > { %v888_v61 = vmul.f32 %v3610_v57, %v878_v56 }
 0x292   : > { %v900_v1 = vadd.f32 %v3611_v62, %v890_v59 }
 0x293   : > { %v898_v2 = vadd.f32 %v3611_v62, %v888_v61 }
 0x294   : > { %v904_v6 = vpack.c.bf16 %v900_v1, %v900_v1 }
 0x2cb   : > { %v844_v46 = vpop.xlane.xlu1 %843 }
 0x2cc   : > { %v849_v47 = vmul.f32 0.0078125, %v844_v46 }
 0x2ce   : > { %v5274_v48 = vsub.f32 %v830_v24, %v849_v47 }
 0x2cf   : > { %v861_v49 = vpop.xlane.xlu1 %860 }
 0x2d0   : > { %v867_v50 = vmul.f32 0.0078125, %v861_v49  ;;  %v857_v51 = vmul.f32 %v5274_v48, %v5274_v48 }
 0x2d2   : > { %v871_v52 = vadd.f32 1e-05, %v867_v50  ;;  %864 = vadd.xlane.f32.xlu1 %v857_v51 }
 0x2d4   : > { %4309 = vrsqrt.f32 %v871_v52 }
 0x2de   : > { %v4310_v58 = vpop.eup %4309 }
 0x2df   : > { %v879_v60 = vmul.f32 %v4310_v58, %v5270_v22 }
 0x2e1   : > { %v889_v63 = vmul.f32 %v3610_v57, %v879_v60 }
 0x2e3   : > { %v899_v3 = vadd.f32 %v3611_v62, %v889_v63 }
 0x2e5   : > { %v902_v4 = vpack.c.bf16 %v899_v3, %v898_v2 }
 0x2e7   : > { %3939 = vmatprep.mubr.bf16.mxu1 %v902_v4  ;;  %3959 = vmatprep.mubr.bf16.mxu0 %v902_v4 }
 0x2e8   : > { %3940 = vmatmul.mubr.bf16.vlgmr.msra.gmra.mrb[0].mxu1 %v904_v6 }
 0x2e9   : > { %3979 = vmatprep.mubr.bf16.mxu1 %v902_v4  ;;  %3964 = vmatpush3.bf16.msra.mxu1 %v4250_v37 }
 0x2ea   : > { %3965 = vmatprep.subr.bf16.mxu1 %v4252_v7 }
 0x2ed   : > { %3966 = vmatpush3.bf16.msra.mxu1 %v4252_v7 }
 0x2ee   : > { %3967 = vmatprep.subr.bf16.mxu1 %v4254_v9 }
 0x2f1   : > { %3968 = vmatpush3.bf16.msra.mxu1 %v4254_v9 }
 0x2f2   : > { %3969 = vmatprep.subr.bf16.mxu1 %v4256_v11 }
 0x2f5   : > { %3970 = vmatpush3.bf16.msra.mxu1 %v4256_v11 }
 0x2f6   : > { %3971 = vmatprep.subr.bf16.mxu1 %v4258_v13 }
 0x2f9   : > { %3972 = vmatpush3.bf16.msra.mxu1 %v4258_v13 }
 0x2fa   : > { %3973 = vmatprep.subr.bf16.mxu1 %v4260_v14 }
 0x2fd   : > { %3974 = vmatpush3.bf16.msra.mxu1 %v4260_v14 }
 0x2fe   : > { %3975 = vmatprep.subr.bf16.mxu1 %v4262_v15 }
 0x301   : > { %3976 = vmatpush3.bf16.msra.mxu1 %v4262_v15 }
 0x302   : > { %3977 = vmatprep.subr.bf16.mxu1 %v4264_v16 }
 0x305   : > { %3978 = vmatpush3.bf16.msra.mxu1 %v4264_v16 }
 0x35f   : > { %v865_v17 = vpop.xlane.xlu1 %864 }
 0x360   : > { %v869_v18 = vmul.f32 0.0078125, %v865_v17 }
 0x362   : > { %v873_v19 = vadd.f32 1e-05, %v869_v18 }
 0x364   : > { %4311 = vrsqrt.f32 %v873_v19 }
 0x36e   : > { %v4312_v20 = vpop.eup %4311 }
 0x36f   : > { %v881_v21 = vmul.f32 %v4312_v20, %v5274_v48 }
 0x371   : > { %v891_v22 = vmul.f32 %v3610_v57, %v881_v21 }
 0x373   : > { %v901_v23 = vadd.f32 %v3611_v62, %v891_v22 }
 0x375   : > { %v903_v24 = vpack.c.bf16 %v901_v23, %v900_v1 }
 0x377   : > { %3960 = vmatmul.mubr.bf16.vlgmr.msra.gmra.mrb[4].mxu0 %v903_v24  ;;  %3980 = vmatmul.mubr.bf16.vlgmr.msra.gmra.mrb[4].mxu1 %v903_v24 }
 0x3bb   : > { %v3941_v25 = vpop.f32.mrb[0].mxu1 }
 0x3bc   : > { %v1003_v26 = vpop.f32.mrb[1].mxu1  ;;  %v5312_v43 = vpack.c.bf16 %v3941_v25, %v3941_v25 }
 0x3bd   : > { %v3942_v27 = vpop.f32.mrb[2].mxu1 }
 0x3be   : > { %v1006_v28 = vpop.f32.mrb[3].mxu1 }
 0x3bf   : > { %v5288_v29 = vpack.c.bf16 %v1006_v28, %v1003_v26 }
 0x3c1   : > { %3987 = vmatprep.mubr.msk.bf16.mxu0 %vm1249_vm2, %v5288_v29 }
 0x44a   : > { %v3961_v30 = vpop.f32.mrb[4].mxu0  ;;  %v3981_v31 = vpop.f32.mrb[4].mxu1 }
 0x44b   : > { %v1115_v32 = vpop.f32.mrb[5].mxu0  ;;  %v1228_v33 = vpop.f32.mrb[5].mxu1 }
 0x44c   : > { %v3962_v34 = vpop.f32.mrb[6].mxu0  ;;  %v3982_v35 = vpop.f32.mrb[6].mxu1 }
 0x44d   : > { %v5292_v36 = vpack.c.bf16 %v3962_v34, %v3961_v30  ;;  %v5294_v37 = vpack.c.bf16 %v3982_v35, %v3981_v31  ;;  %v1118_v38 = vpop.f32.mrb[7].mxu0  ;;  %v1231_v39 = vpop.f32.mrb[7].mxu1  ;;  %v4267_v35 = vld [vmem:[#allocation14] sm:$0xff]  }
 0x44e   : > { %v5296_v40 = vpack.c.bf16 %v1118_v38, %v1115_v32  ;;  %v5298_v41 = vpack.c.bf16 %v1231_v39, %v1228_v33 }
 0x44f   : > { %1415 = vrot.lane.b32.xlu1 %v5292_v36, %s4775_s2  ;;  %v1260_v44 = vsel %vm1249_vm2, %v5292_v36, 0 }
 0x450   : > { %1413 = vrot.lane.b32.xlu0 %v5296_v40, %s4775_s2  ;;  %4079 = vmatprep.subr.msk.bf16.mxu0 %vm1249_vm2, %v5296_v40  ;;  %v1257_v42 = vsel %vm1249_vm2, %v5296_v40, 0 }
 0x451   : > { %3984 = vmatpush3.bf16.xpose.msra.mxu0 %v1257_v42 }
 0x452   : > { %4080 = vmatprep.subr.msk.bf16.mxu0 %vm1249_vm2, %v5292_v36 }
 0x453   : > { %1407 = vrot.lane.b32.xlu1 %v5288_v29, %s4775_s2 }
 0x457   : > { %1409 = vrot.lane.b32.xlu1 %v5312_v43, %s4775_s2 }
 0x459   : > { %3986 = vmatpush3.bf16.xpose.msra.mxu0 %v1260_v44 }
 0x45a   : > { %3991 = vmatprep.subr.bf16.mxu0 %v5298_v41 }
 0x460   : > { %3988 = vmatmul.mubr.msk.bf16.vlgmr.msra.gmra.mrb[8].mxu0 %vm1249_vm2, %v5312_v43 }
 0x461   : > { %3992 = vmatpush3.bf16.msra.mxu0 %v5298_v41 }
 0x462   : > { %3993 = vmatprep.subr.bf16.mxu0 %v5294_v37 }
 0x465   : > { %3994 = vmatpush3.bf16.msra.mxu0 %v5294_v37 }
 0x4c1   : > { %v1416_v45 = vpop.permute.xlu1 %1415 }
 0x4c2   : > { %v1414_v46 = vpop.permute.xlu0 %1413  ;;  %v1427_v49 = vsel %vm1249_vm2, %v1416_v45, 0 }
 0x4c3   : > { %v1424_v47 = vsel %vm1249_vm2, %v1414_v46, 0  ;;  %4081 = vmatprep.subr.msk.bf16.mxu1 %vm1249_vm2, %v1414_v46 }
 0x4c4   : > { %4000 = vmatpush3.bf16.xpose.msra.mxu1 %v1424_v47 }
 0x4c5   : > { %v1408_v48 = vpop.permute.xlu1 %1407  ;;  %4082 = vmatprep.subr.msk.bf16.mxu1 %vm1249_vm2, %v1416_v45 }
 0x4c6   : > { %4003 = vmatprep.mubr.msk.bf16.mxu1 %vm1249_vm2, %v1408_v48 }
 0x4c9   : > { %v1410_v50 = vpop.permute.xlu1 %1409 }
 0x4cc   : > { %4002 = vmatpush3.bf16.xpose.msra.mxu1 %v1427_v49 }
 0x4cd   : > { %4023 = vmatprep.subr.bf16.mxu1 %v4267_v35 }
 0x4d3   : > { %4004 = vmatmul.mubr.msk.bf16.vlgmr.msra.gmra.mrb[8].mxu1 %vm1249_vm2, %v1410_v50 }
 0x4d4   : > { %4024 = vmatpush3.bf16.msra.mxu1 %v4267_v35 }
 0x533   : > { %v3989_v51 = vpop.f32.mrb[8].mxu0 }
 0x534   : > { %v1296_v52 = vpop.f32.mrb[9].mxu0  ;;  %v1316_v57 = vsel %vm1249_vm2, %v3989_v51, -inf }
 0x535   : > { %v3990_v53 = vpop.f32.mrb[10].mxu0  ;;  %v1310_v54 = vsel %vm1249_vm2, %v1296_v52, -inf }
 0x536   : > { %1311 = vmax.xlane.f32.xlu0 %v1310_v54  ;;  %v1299_v55 = vpop.f32.mrb[11].mxu0 }
 0x537   : > { %v1313_v56 = vsel %vm1249_vm2, %v1299_v55, -inf }
 0x538   : > { %1314 = vmax.xlane.f32.xlu1 %v1313_v56 }
 0x53a   : > { %1317 = vmax.xlane.f32.xlu0 %v1316_v57 }
 0x5a6   : > { %v4005_v58 = vpop.f32.mrb[8].mxu1 }
 0x5a7   : > { %v1463_v59 = vpop.f32.mrb[9].mxu1  ;;  %v1483_v60 = vsel %vm1249_vm2, %v4005_v58, -inf }
 0x5a8   : > { %v4006_v61 = vpop.f32.mrb[10].mxu1  ;;  %1484 = vmax.xlane.f32.xlu1 %v1483_v60  ;;  %v1477_v62 = vsel %vm1249_vm2, %v1463_v59, -inf  ;;  %v4266_v60 = vld [vmem:[#allocation14 + $0x18] sm:$0xff]  }
 0x5a9   : > { %v1466_v63 = vpop.f32.mrb[11].mxu1  ;;  %1478 = vmax.xlane.f32.xlu0 %v1477_v62 }
 0x5aa   : > { %v1480_v0 = vsel %vm1249_vm2, %v1466_v63, -inf }
 0x5ad   : > { %1481 = vmax.xlane.f32.xlu0 %v1480_v0 }
 0x5c3   : > { %v1312_v1 = vpop.xlane.xlu0 %1311 }
 0x5c4   : > { %v1319_v3 = vsub.f32 %v1296_v52, %v1312_v1 }
 0x5c5   : > { %v1315_v2 = vpop.xlane.xlu1 %1314 }
 0x5c6   : > { %v1320_v4 = vsub.f32 %v1299_v55, %v1315_v2  ;;  %v1322_v8 = vmul.f32 1.442695, %v1319_v3 }
 0x5c7   : > { %v1318_v5 = vpop.xlane.xlu0 %1317 }
 0x5c8   : > { %v1324_v6 = vmul.f32 1.442695, %v1320_v4  ;;  %v1321_v7 = vsub.f32 %v3989_v51, %v1318_v5  ;;  %v4265_v51 = vld [vmem:[#allocation14 + $0x10] sm:$0xff]  }
 0x5ca   : > { %4313 = vpow2.f32 %v1324_v6  ;;  %v1326_v9 = vmul.f32 1.442695, %v1321_v7 }
 0x5cc   : > { %4315 = vpow2.f32 %v1326_v9 }
 0x5cd   : > { %4317 = vpow2.f32 %v1322_v8 }
 0x5d4   : > { %v4314_v10 = vpop.eup %4313 }
 0x5d5   : > { %v1331_v11 = vsel %vm1249_vm2, %v4314_v10, 0.0 }
 0x5d6   : > { %v4316_v12 = vpop.eup %4315  ;;  %1332 = vadd.xlane.f32.xlu1 %v1331_v11 }
 0x5d7   : > { %v1334_v13 = vsel %vm1249_vm2, %v4316_v12, 0.0  ;;  %v4318_v14 = vpop.eup %4317 }
 0x5d8   : > { %1335 = vadd.xlane.f32.xlu0 %v1334_v13  ;;  %v1328_v15 = vsel %vm1249_vm2, %v4318_v14, 0.0 }
 0x5dc   : > { %1329 = vadd.xlane.f32.xlu0 %v1328_v15 }
 0x635   : > { %v1485_v16 = vpop.xlane.xlu1 %1484 }
 0x636   : > { %v1488_v17 = vsub.f32 %v4005_v58, %v1485_v16  ;;  %v1479_v18 = vpop.xlane.xlu0 %1478 }
 0x637   : > { %v1486_v19 = vsub.f32 %v1463_v59, %v1479_v18 }
 0x638   : > { %v1493_v20 = vmul.f32 1.442695, %v1488_v17 }
 0x639   : > { %v1489_v21 = vmul.f32 1.442695, %v1486_v19 }
 0x63a   : > { %4319 = vpow2.f32 %v1493_v20  ;;  %v1482_v22 = vpop.xlane.xlu0 %1481 }
 0x63b   : > { %v1487_v23 = vsub.f32 %v1466_v63, %v1482_v22  ;;  %4321 = vpow2.f32 %v1489_v21 }
 0x63d   : > { %v1491_v24 = vmul.f32 1.442695, %v1487_v23 }
 0x63f   : > { %4323 = vpow2.f32 %v1491_v24 }
 0x644   : > { %v4320_v25 = vpop.eup %4319 }
 0x645   : > { %v1501_v26 = vsel %vm1249_vm2, %v4320_v25, 0.0  ;;  %v4322_v27 = vpop.eup %4321 }
 0x646   : > { %1502 = vadd.xlane.f32.xlu1 %v1501_v26  ;;  %v1495_v30 = vsel %vm1249_vm2, %v4322_v27, 0.0 }
 0x649   : > { %v4324_v28 = vpop.eup %4323 }
 0x64a   : > { %1496 = vadd.xlane.f32.xlu1 %v1495_v30  ;;  %v1498_v31 = vsel %vm1249_vm2, %v4324_v28, 0.0 }
 0x64b   : > { %1499 = vadd.xlane.f32.xlu0 %v1498_v31 }
 0x65b   : > { %1516 = vrot.lane.b32.xlu1 %v5294_v37, %s4775_s2 }
 0x65f   : > { %1717 = vrot.lane.b32.xlu1 %v5296_v40, %s4776_s8 }
 0x661   : > { %1514 = vrot.lane.b32.xlu0 %v5298_v41, %s4775_s2 }
 0x663   : > { %1719 = vrot.lane.b32.xlu1 %v5292_v36, %s4776_s8  ;;  %v1333_v32 = vpop.xlane.xlu1 %1332 }
 0x665   : > { %1713 = vrot.lane.b32.xlu0 %v5288_v29, %s4776_s8  ;;  %v1336_v33 = vpop.xlane.xlu0 %1335 }
 0x666   : > { %4325 = vrcp.f32 %v1336_v33 }
 0x667   : > { %1715 = vrot.lane.b32.xlu1 %v5312_v43, %s4776_s8  ;;  %4327 = vrcp.f32 %v1333_v32 }
 0x669   : > { %1956 = vrot.lane.b32.xlu0 %v5296_v40, %s4777_s4  ;;  %v1330_v34 = vpop.xlane.xlu0 %1329 }
 0x66a   : > { %4329 = vrcp.f32 %v1330_v34 }
 0x66b   : > { %1958 = vrot.lane.b32.xlu1 %v5292_v36, %s4777_s4  ;;  %v4268_v36 = vld [vmem:[#allocation14 + $0x8] sm:$0xff]  }
 0x66c   : > { %4025 = vmatprep.subr.bf16.mxu1 %v4268_v36 }
 0x66d   : > { %1952 = vrot.lane.b32.xlu0 %v5288_v29, %s4777_s4  ;;  %4026 = vmatpush3.bf16.msra.mxu1 %v4268_v36 }
 0x66f   : > { %1954 = vrot.lane.b32.xlu1 %v5312_v43, %s4777_s4 }
 0x670   : > { %v4326_v38 = vpop.eup %4325 }
 0x671   : > { %v4328_v39 = vpop.eup %4327  ;;  %v1342_v44 = vmul.f32 %v4326_v38, %v4316_v12 }
 0x672   : > { %v1341_v40 = vmul.f32 %v4328_v39, %v4314_v10 }
 0x673   : > { %v1344_v47 = vpack.c.bf16 %v1342_v44, %v1342_v44 }
 0x674   : > { %v4330_v42 = vpop.eup %4329 }
 0x675   : > { %v1340_v45 = vmul.f32 %v4330_v42, %v4318_v14 }
 0x677   : > { %v1343_v46 = vpack.c.bf16 %v1341_v40, %v1340_v45 }
 0x679   : > { %3995 = vmatprep.mubr.msk.bf16.mxu0 %vm1249_vm2, %v1343_v46 }
 0x67a   : > { %3996 = vmatmul.mubr.msk.bf16.vlgmr.msra.gmra.mrb[12].mxu0 %vm1249_vm2, %v1344_v47 }
 0x6d3   : > { %v1503_v29 = vpop.xlane.xlu1 %1502 }
 0x6d4   : > { %4331 = vrcp.f32 %v1503_v29 }
 0x6d7   : > { %v1497_v43 = vpop.xlane.xlu1 %1496 }
 0x6d8   : > { %4333 = vrcp.f32 %v1497_v43  ;;  %v1500_v48 = vpop.xlane.xlu0 %1499 }
 0x6d9   : > { %4335 = vrcp.f32 %v1500_v48 }
 0x6db   : > { %v1517_v50 = vpop.permute.xlu1 %1516 }
 0x6dc   : > { %v1515_v49 = vpop.permute.xlu0 %1514 }
 0x6dd   : > { %4007 = vmatprep.subr.bf16.mxu0 %v1515_v49 }
 0x6de   : > { %4008 = vmatpush3.bf16.msra.mxu0 %v1515_v49  ;;  %v4332_v52 = vpop.eup %4331 }
 0x6df   : > { %4009 = vmatprep.subr.bf16.mxu0 %v1517_v50  ;;  %v1509_v55 = vmul.f32 %v4332_v52, %v4320_v25  ;;  %v1718_v61 = vpop.permute.xlu1 %1717 }
 0x6e0   : > { %v1728_v10 = vsel %vm1249_vm2, %v1718_v61, 0  ;;  %v1714_v11 = vpop.permute.xlu0 %1713 }
 0x6e1   : > { %v1511_v59 = vpack.c.bf16 %v1509_v55, %v1509_v55 }
 0x6e2   : > { %v4334_v53 = vpop.eup %4333  ;;  %4010 = vmatpush3.bf16.msra.mxu0 %v1517_v50 }
 0x6e3   : > { %v4336_v54 = vpop.eup %4335  ;;  %v1507_v56 = vmul.f32 %v4334_v53, %v4322_v27  ;;  %4015 = vmatprep.subr.bf16.mxu0 %v4265_v51  ;;  %v1720_v12 = vpop.permute.xlu1 %1719 }
 0x6e4   : > { %v1508_v57 = vmul.f32 %v4336_v54, %v4324_v28  ;;  %v1731_v13 = vsel %vm1249_vm2, %v1720_v12, 0  ;;  %v1957_v14 = vpop.permute.xlu0 %1956 }
 0x6e5   : > { %v1967_v16 = vsel %vm1249_vm2, %v1957_v14, 0 }
 0x6e6   : > { %v1510_v58 = vpack.c.bf16 %v1508_v57, %v1507_v56 }
 0x6e7   : > { %v1716_v15 = vpop.permute.xlu1 %1715 }
 0x6e8   : > { %4011 = vmatprep.mubr.msk.bf16.mxu0 %vm1249_vm2, %v1510_v58  ;;  %v1953_v17 = vpop.permute.xlu0 %1952 }
 0x6e9   : > { %4012 = vmatmul.mubr.msk.bf16.vlgmr.msra.gmra.mrb[16].mxu0 %vm1249_vm2, %v1511_v59 }
 0x6ea   : > { %4016 = vmatpush3.bf16.msra.mxu0 %v4265_v51 }
 0x6eb   : > { %4017 = vmatprep.subr.bf16.mxu0 %v4266_v60  ;;  %v1959_v18 = vpop.permute.xlu1 %1958 }
 0x6ec   : > { %v1970_v19 = vsel %vm1249_vm2, %v1959_v18, 0 }
 0x6ee   : > { %4018 = vmatpush3.bf16.msra.mxu0 %v4266_v60 }
 0x6ef   : > { %4083 = vmatprep.subr.msk.bf16.mxu0 %vm1249_vm2, %v1718_v61  ;;  %v1955_v20 = vpop.permute.xlu1 %1954 }
 0x74d   : > { %v3997_v62 = vpop.f32.mrb[12].mxu0 }
 0x74e   : > { %v1385_v63 = vpop.f32.mrb[13].mxu0  ;;  %v1400_v3 = vpack.c.bf16 %v3997_v62, %v3997_v62 }
 0x74f   : > { %v3998_v0 = vpop.f32.mrb[14].mxu0 }
 0x750   : > { %v1388_v1 = vpop.f32.mrb[15].mxu0 }
 0x751   : > { %v1399_v2 = vpack.c.bf16 %v1388_v1, %v1385_v63 }
 0x753   : > { %4027 = vmatprep.mubr.msk.bf16.mxu1 %vm1249_vm2, %v1399_v2 }
 0x754   : > { %4028 = vmatmul.mubr.msk.bf16.vlgmr.msra.gmra.mrb[12].mxu1 %vm1249_vm2, %v1400_v3 }
 0x7bc   : > { %v4013_v4 = vpop.f32.mrb[16].mxu0 }
 0x7bd   : > { %v1560_v5 = vpop.f32.mrb[17].mxu0  ;;  %v1575_v9 = vpack.c.bf16 %v4013_v4, %v4013_v4  ;;  %v4269_v4 = vld [vmem:[#allocation14 + $0x20] sm:$0xff]  }
 0x7be   : > { %v4014_v6 = vpop.f32.mrb[18].mxu0 }
 0x7bf   : > { %v1563_v7 = vpop.f32.mrb[19].mxu0 }
 0x7c0   : > { %v1574_v8 = vpack.c.bf16 %v1563_v7, %v1560_v5 }
 0x7c2   : > { %4019 = vmatprep.mubr.msk.bf16.mxu0 %vm1249_vm2, %v1574_v8 }
 0x7c3   : > { %4020 = vmatmul.mubr.msk.bf16.vlgmr.msra.gmra.mrb[20].mxu0 %vm1249_vm2, %v1575_v9 }
 0x7c4   : > { %4032 = vmatpush3.bf16.xpose.msra.mxu0 %v1728_v10  ;;  %4035 = vmatprep.mubr.msk.bf16.mxu0 %vm1249_vm2, %v1714_v11 }
 0x7c5   : > { %4084 = vmatprep.subr.msk.bf16.mxu0 %vm1249_vm2, %v1720_v12 }
 0x7cc   : > { %4034 = vmatpush3.bf16.xpose.msra.mxu0 %v1731_v13 }
 0x7cd   : > { %4085 = vmatprep.subr.msk.bf16.mxu0 %vm1249_vm2, %v1957_v14 }
 0x7d3   : > { %4036 = vmatmul.mubr.msk.bf16.vlgmr.msra.gmra.mrb[24].mxu0 %vm1249_vm2, %v1716_v15 }
 0x7d4   : > { %4056 = vmatpush3.bf16.xpose.msra.mxu0 %v1967_v16  ;;  %4059 = vmatprep.mubr.msk.bf16.mxu0 %vm1249_vm2, %v1953_v17 }
 0x7d5   : > { %4086 = vmatprep.subr.msk.bf16.mxu0 %vm1249_vm2, %v1959_v18 }
 0x7dc   : > { %4058 = vmatpush3.bf16.xpose.msra.mxu0 %v1970_v19 }
 0x7e3   : > { %4060 = vmatmul.mubr.msk.bf16.vlgmr.msra.gmra.mrb[28].mxu0 %vm1249_vm2, %v1955_v20 }
 0x827   : > { %v4029_v21 = vpop.f32.mrb[12].mxu1 }
 0x828   : > { %v1699_v22 = vpop.f32.mrb[13].mxu1 }
 0x829   : > { %v4030_v23 = vpop.f32.mrb[14].mxu1 }
 0x82a   : > { %v1702_v24 = vpop.f32.mrb[15].mxu1 }
 0x896   : > { %v4021_v25 = vpop.f32.mrb[20].mxu0 }
 0x897   : > { %v5382_v26 = vadd.f32 %v4029_v21, %v4021_v25  ;;  %v1633_v27 = vpop.f32.mrb[21].mxu0 }
 0x898   : > { %v5384_v28 = vadd.f32 %v1699_v22, %v1633_v27  ;;  %v4022_v30 = vpop.f32.mrb[22].mxu0 }
 0x899   : > { %v1636_v31 = vpop.f32.mrb[23].mxu0 }
 0x89a   : > { %v5386_v32 = vadd.f32 %v1702_v24, %v1636_v31  ;;  %v4270_v31 = vld [vmem:[#allocation14 + $0x28] sm:$0xff]  }
 0x8a6   : > { %v4037_v33 = vpop.f32.mrb[24].mxu0 }
 0x8a7   : > { %v1767_v34 = vpop.f32.mrb[25].mxu0  ;;  %v1787_v44 = vsel %vm1249_vm2, %v4037_v33, -inf }
 0x8a8   : > { %v4038_v35 = vpop.f32.mrb[26].mxu0  ;;  %v1781_v38 = vsel %vm1249_vm2, %v1767_v34, -inf }
 0x8a9   : > { %1782 = vmax.xlane.f32.xlu0 %v1781_v38  ;;  %v1770_v39 = vpop.f32.mrb[27].mxu0 }
 0x8aa   : > { %v1784_v42 = vsel %vm1249_vm2, %v1770_v39, -inf }
 0x8ab   : > { %1785 = vmax.xlane.f32.xlu1 %v1784_v42 }
 0x8ad   : > { %1788 = vmax.xlane.f32.xlu0 %v1787_v44 }
 0x8b6   : > { %v5391_v45 = vpop.f32.mrb[28].mxu0 }
 0x8b7   : > { %v5393_v40 = vpop.f32.mrb[29].mxu0  ;;  %v2026_v62 = vsel %vm1249_vm2, %v5391_v45, -inf }
 0x8b8   : > { %v4062_v46 = vpop.f32.mrb[30].mxu0  ;;  %v2020_v60 = vsel %vm1249_vm2, %v5393_v40, -inf }
 0x8b9   : > { %v2009_v47 = vpop.f32.mrb[31].mxu0 }
 0x8ba   : > { %v2023_v61 = vsel %vm1249_vm2, %v2009_v47, -inf }
 0x936   : > { %v1783_v36 = vpop.xlane.xlu0 %1782 }
 0x937   : > { %v1790_v29 = vsub.f32 %v1767_v34, %v1783_v36 }
 0x938   : > { %v1786_v43 = vpop.xlane.xlu1 %1785 }
 0x939   : > { %v1793_v48 = vmul.f32 1.442695, %v1790_v29  ;;  %v1791_v49 = vsub.f32 %v1770_v39, %v1786_v43 }
 0x93a   : > { %v1789_v50 = vpop.xlane.xlu0 %1788 }
 0x93b   : > { %4337 = vpow2.f32 %v1793_v48  ;;  %v1795_v51 = vmul.f32 1.442695, %v1791_v49  ;;  %v1792_v52 = vsub.f32 %v4037_v33, %v1789_v50 }
 0x93d   : > { %4339 = vpow2.f32 %v1795_v51  ;;  %v1797_v53 = vmul.f32 1.442695, %v1792_v52  ;;  %v4271_v51 = vld [vmem:[#allocation14 + $0x30] sm:$0xff]   ;;  %v4272_v52 = vld [vmem:[#allocation14 + $0x38] sm:$0xff]  }
 0x93f   : > { %4341 = vpow2.f32 %v1797_v53 }
 0x945   : > { %v4338_v54 = vpop.eup %4337 }
 0x946   : > { %v1799_v55 = vsel %vm1249_vm2, %v4338_v54, 0.0 }
 0x947   : > { %v4340_v56 = vpop.eup %4339  ;;  %1800 = vadd.xlane.f32.xlu0 %v1799_v55 }
 0x948   : > { %v1802_v59 = vsel %vm1249_vm2, %v4340_v56, 0.0 }
 0x949   : > { %v4342_v57 = vpop.eup %4341 }
 0x94a   : > { %v1805_v58 = vsel %vm1249_vm2, %v4342_v57, 0.0 }
 0x94b   : > { %1806 = vadd.xlane.f32.xlu1 %v1805_v58  ;;  %1803 = vadd.xlane.f32.xlu0 %v1802_v59 }
 0x95c   : > { %1818 = vrot.lane.b32.xlu1 %v5294_v37, %s4776_s8 }
 0x961   : > { %1816 = vrot.lane.b32.xlu0 %v5298_v41, %s4776_s8 }
 0x980   : > { %2021 = vmax.xlane.f32.xlu1 %v2020_v60  ;;  %2024 = vmax.xlane.f32.xlu0 %v2023_v61 }
 0x984   : > { %2027 = vmax.xlane.f32.xlu0 %v2026_v62 }
 0x9d4   : > { %v1801_v63 = vpop.xlane.xlu0 %1800 }
 0x9d5   : > { %4343 = vrcp.f32 %v1801_v63 }
 0x9d8   : > { %v1804_v0 = vpop.xlane.xlu0 %1803  ;;  %v1807_v1 = vpop.xlane.xlu1 %1806 }
 0x9d9   : > { %4345 = vrcp.f32 %v1804_v0 }
 0x9da   : > { %4347 = vrcp.f32 %v1807_v1 }
 0x9dc   : > { %v1817_v2 = vpop.permute.xlu0 %1816  ;;  %v1819_v3 = vpop.permute.xlu1 %1818 }
 0x9dd   : > { %4039 = vmatprep.subr.bf16.mxu1 %v1817_v2 }
 0x9de   : > { %4040 = vmatpush3.bf16.msra.mxu1 %v1817_v2 }
 0x9df   : > { %4041 = vmatprep.subr.bf16.mxu1 %v1819_v3  ;;  %v4344_v5 = vpop.eup %4343 }
 0x9e0   : > { %v1811_v8 = vmul.f32 %v4344_v5, %v4338_v54  ;;  %v2203_v5 = vstv %s2201_s14  ;;  %s745_s14 = scalar_lea.vmem [#allocation19], %s4089_s0  ;;  %s3393_s0 = scalar_lea.sflag [#allocation4], %s5215_s15 }
 0x9e1   : > { %s3406_s13 = sshll.u32 %s745_s14, 4  ;;  %s5675_s13 = int_to_ptr.vmem [resolvable:$true] %s3406_s13 }
 0x9e2   : > { %4042 = vmatpush3.bf16.msra.mxu1 %v1819_v3  ;;  %s4665_s7 = scalar_lea.vmem %s5675_s13, 384  ;;  %p4672_p5 = scmp.lt.s32.totalorder %s5675_s13, %s4670_s26 }
 0x9e3   : > { %v4346_v6 = vpop.eup %4345  ;;  %4047 = vmatprep.subr.bf16.mxu1 %v4269_v4  ;;  %p4666_p3 = scmp.ne.s32.totalorder %s5675_s13, %s4665_s7 }
 0x9e4   : > { %v4348_v7 = vpop.eup %4347  ;;  %v1812_v9 = vmul.f32 %v4346_v6, %v4340_v56 }
 0x9e5   : > { %v1813_v10 = vmul.f32 %v4348_v7, %v4342_v57  ;;  %p4667_p4 = pnand %p4666_p3, %p5809_p6 }
 0x9e6   : > { %v1814_v11 = vpack.c.bf16 %v1812_v9, %v1811_v8 }
 0x9e7   : > { %v1815_v12 = vpack.c.bf16 %v1813_v10, %v1813_v10  ;;  %p4668_p1 = pneg %p4667_p4 }
 0x9e8   : > { %4043 = vmatprep.mubr.msk.bf16.mxu1 %vm1249_vm2, %v1814_v11 }
 0x9e9   : > { %4044 = vmatmul.mubr.msk.bf16.vlgmr.msra.gmra.mrb[16].mxu1 %vm1249_vm2, %v1815_v12 }
 0x9ea   : > { %4048 = vmatpush3.bf16.msra.mxu1 %v4269_v4 }
 0x9eb   : > { %4049 = vmatprep.subr.bf16.mxu1 %v4270_v31 }
 0x9ee   : > { %4050 = vmatpush3.bf16.msra.mxu1 %v4270_v31 }
 0xa0d   : > { %v2025_v13 = vpop.xlane.xlu0 %2024  ;;  %v2022_v14 = vpop.xlane.xlu1 %2021 }
 0xa0e   : > { %v2030_v15 = vsub.f32 %v2009_v47, %v2025_v13  ;;  %v2029_v17 = vsub.f32 %v5393_v40, %v2022_v14  ;;  %v4391_v13 = vld [vmem:[%s5221_s25] sm:$0xff] }
 0xa10   : > { %v2034_v16 = vmul.f32 1.442695, %v2030_v15  ;;  %v2032_v20 = vmul.f32 1.442695, %v2029_v17 }
 0xa11   : > { %v2028_v18 = vpop.xlane.xlu0 %2027 }
 0xa12   : > { %4349 = vpow2.f32 %v2034_v16  ;;  %v2031_v19 = vsub.f32 %v5391_v45, %v2028_v18  ;;  %v4392_v16 = vld [vmem:[%s5221_s25 + $0x8] sm:$0xff]  ;;  %v4393_v18 = vld [vmem:[%s5221_s25 + $0x10] sm:$0xff] }
 0xa14   : > { %v2036_v21 = vmul.f32 1.442695, %v2031_v19 }
 0xa16   : > { %4351 = vpow2.f32 %v2036_v21  ;;  %v2269_v21 = vld [vmem:[#allocation15 + $0x20] sm:$0xff] }
 0xa17   : > { %4353 = vpow2.f32 %v2032_v20  ;;  %v2265_v20 = vld [vmem:[#allocation15] sm:$0xff] }
 0xa1c   : > { %v4350_v22 = vpop.eup %4349 }
 0xa1d   : > { %v2041_v23 = vsel %vm1249_vm2, %v4350_v22, 0.0 }
 0xa1e   : > { %2042 = vadd.xlane.f32.xlu0 %v2041_v23  ;;  %v3672_v23 = vcombine.low %v2265_v20, %v2269_v21 }
 0xa20   : > { %v4352_v24 = vpop.eup %4351 }
 0xa21   : > { %v2044_v25 = vsel %vm1249_vm2, %v4352_v24, 0.0  ;;  %v4354_v27 = vpop.eup %4353 }
 0xa22   : > { %2045 = vadd.xlane.f32.xlu1 %v2044_v25  ;;  %v2038_v30 = vsel %vm1249_vm2, %v4354_v27, 0.0  ;;  %v2270_v25 = vld [vmem:[#allocation15 + $0x28] sm:$0xff] }
 0xa26   : > { %2039 = vadd.xlane.f32.xlu1 %v2038_v30  ;;  %v2277_v30 = vld [vmem:[#allocation15 + $0x60] sm:$0xff] }
 0xa34   : > { %2055 = vrot.lane.b32.xlu0 %v5298_v41, %s4777_s4 }
 0xa37   : > { %2057 = vrot.lane.b32.xlu1 %v5294_v37, %s4777_s4  ;;  %s5807_s4 = sld [smem:[#allocation43_spill]] }
 0xaab   : > { %v2043_v33 = vpop.xlane.xlu0 %2042 }
 0xaac   : > { %4355 = vrcp.f32 %v2043_v33 }
 0xaaf   : > { %v2056_v34 = vpop.permute.xlu0 %2055  ;;  %v2046_v35 = vpop.xlane.xlu1 %2045 }
 0xab0   : > { %4063 = vmatprep.subr.bf16.mxu1 %v2056_v34 }
 0xab3   : > { %v2040_v38 = vpop.xlane.xlu1 %2039 }
 0xab4   : > { %4357 = vrcp.f32 %v2040_v38  ;;  %v2278_v38 = vld [vmem:[#allocation15 + $0x68] sm:$0xff] }
 0xab5   : > { %4359 = vrcp.f32 %v2046_v35  ;;  %v2274_v35 = vld [vmem:[#allocation15 + $0x48] sm:$0xff] }
 0xab6   : > { %v4356_v39 = vpop.eup %4355 }
 0xab7   : > { %v2051_v36 = vmul.f32 %v4356_v39, %v4350_v22  ;;  %v2058_v48 = vpop.permute.xlu1 %2057  ;;  %v2266_v22 = vld [vmem:[#allocation15 + $0x8] sm:$0xff]  ;;  %v3683_v39 = vcombine.high %v2274_v35, %v2278_v38 }
 0xab8   : > { %v3674_v31 = vcombine.low %v2266_v22, %v2270_v25  ;;  %v3675_v33 = vcombine.high %v2266_v22, %v2270_v25 }
 0xabc   : > { %v4045_v42 = vpop.f32.mrb[16].mxu1 }
 0xabd   : > { %v1862_v44 = vpop.f32.mrb[17].mxu1  ;;  %v1877_v29 = vpack.c.bf16 %v4045_v42, %v4045_v42 }
 0xabe   : > { %v4358_v45 = vpop.eup %4357  ;;  %v4046_v40 = vpop.f32.mrb[18].mxu1 }
 0xabf   : > { %v1865_v46 = vpop.f32.mrb[19].mxu1  ;;  %v2050_v47 = vmul.f32 %v4358_v45, %v4354_v27  ;;  %v4360_v37 = vpop.eup %4359  ;;  %v2273_v27 = vld [vmem:[#allocation15 + $0x40] sm:$0xff] }
 0xac0   : > { %v1876_v41 = vpack.c.bf16 %v1865_v46, %v1862_v44  ;;  %v2052_v49 = vmul.f32 %v4360_v37, %v4352_v24  ;;  %v3673_v24 = vcombine.high %v2265_v20, %v2269_v21  ;;  %v3680_v42 = vcombine.low %v2273_v27, %v2277_v30  ;;  %v2317_v20 = vld [vmem:[#allocation15 + $0x1a0] sm:$0xff]  ;;  %v2314_v21 = vld [vmem:[#allocation15 + $0x188] sm:$0xff] }
 0xac1   : > { %v2053_v43 = vpack.c.bf16 %v2051_v36, %v2050_v47  ;;  %v3682_v44 = vcombine.low %v2274_v35, %v2278_v38  ;;  %v2326_v35 = vld [vmem:[#allocation15 + $0x1e8] sm:$0xff] }
 0xac2   : > { %4051 = vmatprep.mubr.msk.bf16.mxu1 %vm1249_vm2, %v1876_v41  ;;  %v2054_v50 = vpack.c.bf16 %v2052_v49, %v2052_v49  ;;  %2691 = vmatprep.subr.bf16.mxu0 %v3673_v24 }
 0xac3   : > { %4052 = vmatmul.mubr.msk.bf16.vlgmr.msra.gmra.mrb[20].mxu1 %vm1249_vm2, %v1877_v29  ;;  %2692 = vmatpush1.bf16.msra.mxu0 %v3672_v23  ;;  %v2318_v23 = vld [vmem:[#allocation15 + $0x1a8] sm:$0xff] }
 0xac4   : > { %4064 = vmatpush3.bf16.msra.mxu1 %v2056_v34  ;;  %4067 = vmatprep.mubr.msk.bf16.mxu1 %vm1249_vm2, %v2053_v43  ;;  %v3681_v34 = vcombine.high %v2273_v27, %v2277_v30  ;;  %v3722_v25 = vcombine.low %v2314_v21, %v2318_v23  ;;  %v3723_v27 = vcombine.high %v2314_v21, %v2318_v23  ;;  %v2321_v30 = vld [vmem:[#allocation15 + $0x1c0] sm:$0xff]  ;;  %v2291_v21 = vld [vmem:[#allocation15 + $0xd0] sm:$0xff]  ;;  %v2292_v23 = vld [vmem:[#allocation15 + $0xd8] sm:$0xff] }
 0xac5   : > { %4065 = vmatprep.subr.bf16.mxu1 %v2058_v48 }
 0xac6   : > { %2693 = vmatprep.subr.bf16.mxu0 %v3681_v34 }
 0xac7   : > { %2694 = vmatpush1.bf16.msra.mxu0 %v3680_v42 }
 0xac8   : > { %4066 = vmatpush3.bf16.msra.mxu1 %v2058_v48 }
 0xac9   : > { %4071 = vmatprep.subr.bf16.mxu1 %v4271_v51 }
 0xacb   : > { %4068 = vmatmul.mubr.msk.bf16.vlgmr.msra.gmra.mrb[24].mxu1 %vm1249_vm2, %v2054_v50 }
 0xacc   : > { %4072 = vmatpush3.bf16.msra.mxu1 %v4271_v51  ;;  %v2281_v51 = vld [vmem:[#allocation15 + $0x80] sm:$0xff] }
 0xacd   : > { %4073 = vmatprep.subr.bf16.mxu1 %v4272_v52 }
 0xad0   : > { %4074 = vmatpush3.bf16.msra.mxu1 %v4272_v52  ;;  %v2285_v52 = vld [vmem:[#allocation15 + $0xa0] sm:$0xff] }
 0xad1   : > { %2742 = vmatprep.subr.bf16.mxu1 %v3675_v33  ;;  %v2322_v33 = vld [vmem:[#allocation15 + $0x1c8] sm:$0xff] }
 0xad2   : > { %v3731_v42 = vcombine.high %v2322_v33, %v2326_v35 }
 0xb96   : > { %v4053_v53 = vpop.f32.mrb[20].mxu1 }
 0xb97   : > { %v1951_v54 = vadd.f32 %v4053_v53, %v5382_v26  ;;  %v1935_v55 = vpop.f32.mrb[21].mxu1  ;;  %v2282_v53 = vld [vmem:[#allocation15 + $0x88] sm:$0xff] }
 0xb98   : > { %v1949_v56 = vadd.f32 %v1935_v55, %v5384_v28  ;;  %v4054_v57 = vpop.f32.mrb[22].mxu1  ;;  %v3668_v28 = vld [vmem:[%s5803_s20] ss:$0 sm:$0xff]  ;;  %v2286_v55 = vld [vmem:[#allocation15 + $0xa8] sm:$0xff] }
 0xb99   : > { %v1938_v58 = vpop.f32.mrb[23].mxu1  ;;  %v3690_v57 = vcombine.low %v2282_v53, %v2286_v55 }
 0xb9a   : > { %v1950_v59 = vadd.f32 %v1938_v58, %v5386_v32  ;;  %v3691_v58 = vcombine.high %v2282_v53, %v2286_v55 }
 0xb9e   : > { %v4069_v60 = vpop.f32.mrb[24].mxu1 }
 0xb9f   : > { %v2101_v61 = vpop.f32.mrb[25].mxu1  ;;  %v2116_v1 = vpack.c.bf16 %v4069_v60, %v4069_v60  ;;  %v2293_v60 = vld [vmem:[#allocation15 + $0xe0] sm:$0xff] }
 0xba0   : > { %v4070_v62 = vpop.f32.mrb[26].mxu1 }
 0xba1   : > { %v2104_v63 = vpop.f32.mrb[27].mxu1 }
 0xba2   : > { %v2115_v0 = vpack.c.bf16 %v2104_v63, %v2101_v61  ;;  %v2290_v61 = vld [vmem:[#allocation15 + $0xc8] sm:$0xff] }
 0xba3   : > { %v2294_v63 = vld [vmem:[#allocation15 + $0xe8] sm:$0xff] }
 0xba4   : > { %4075 = vmatprep.mubr.msk.bf16.mxu1 %vm1249_vm2, %v2115_v0 }
 0xba5   : > { %4076 = vmatmul.mubr.msk.bf16.vlgmr.msra.gmra.mrb[28].mxu1 %vm1249_vm2, %v2116_v1  ;;  %v3698_v1 = vcombine.low %v2290_v61, %v2294_v63 }
 0xba6   : > { %2743 = vmatpush1.bf16.msra.mxu1 %v3674_v31  ;;  %v2325_v31 = vld [vmem:[#allocation15 + $0x1e0] sm:$0xff] }
 0xba7   : > { %2744 = vmatprep.subr.bf16.mxu1 %v3683_v39  ;;  %v3729_v34 = vcombine.high %v2321_v30, %v2325_v31  ;;  %v3728_v38 = vcombine.low %v2321_v30, %v2325_v31  ;;  %v3730_v39 = vcombine.low %v2322_v33, %v2326_v35  ;;  %v2303_v35 = vld [vmem:[#allocation15 + $0x130] sm:$0xff] }
 0xbaa   : > { %2745 = vmatpush1.bf16.msra.mxu1 %v3682_v44  ;;  %v2267_v44 = vld [vmem:[#allocation15 + $0x10] sm:$0xff] }
 0xbab   : > { %2746 = vmatprep.subr.bf16.mxu1 %v3691_v58 }
 0xbae   : > { %2747 = vmatpush1.bf16.msra.mxu1 %v3690_v57 }
 0xc78   : > { %v4077_v26 = vpop.f32.mrb[28].mxu1 }
 0xc79   : > { %v2190_v2 = vadd.f32 %v4077_v26, %v1951_v54  ;;  %v2174_v32 = vpop.f32.mrb[29].mxu1  ;;  %v3689_v54 = vcombine.high %v2281_v51, %v2285_v52  ;;  %v3699_v26 = vcombine.high %v2290_v61, %v2294_v63 }
 0xc7a   : > { %v2188_v3 = vadd.f32 %v2174_v32, %v1949_v56  ;;  %v4078_v4 = vpop.f32.mrb[30].mxu1  ;;  %v3688_v56 = vcombine.low %v2281_v51, %v2285_v52  ;;  %v2298_v32 = vld [vmem:[#allocation15 + $0x108] sm:$0xff] }
 0xc7b   : > { %v2177_v6 = vpop.f32.mrb[31].mxu1  ;;  %v2200_v9 = vadd.f32 %v3668_v28, %v2190_v2  ;;  %2695 = vmatprep.subr.bf16.mxu0 %v3689_v54  ;;  %2748 = vmatprep.subr.bf16.mxu1 %v3699_v26  ;;  %v2297_v2 = vld [vmem:[#allocation15 + $0x100] sm:$0xff]  ;;  %v2302_v4 = vld [vmem:[#allocation15 + $0x128] sm:$0xff] }
 0xc7c   : > { %v2198_v7 = vadd.f32 %v3668_v28, %v2188_v3  ;;  %v2189_v8 = vadd.f32 %v2177_v6, %v1950_v59  ;;  %2696 = vmatpush1.bf16.msra.mxu0 %v3688_v56  ;;  %v2289_v59 = vld [vmem:[#allocation15 + $0xc0] sm:$0xff]  ;;  %2749 = vmatpush1.bf16.msra.mxu1 %v3698_v1  ;;  %v3706_v6 = vcombine.low %v2298_v32, %v2302_v4 }
 0xc7d   : > { %v2206_v15 = vmul.f32 %v2203_v5, %v2200_v9  ;;  %v3697_v62 = vcombine.high %v2289_v59, %v2293_v60  ;;  %v3696_v0 = vcombine.low %v2289_v59, %v2293_v60  ;;  %v2309_v9 = vld [vmem:[#allocation15 + $0x160] sm:$0xff] }
 0xc7e   : > { %v2204_v10 = vmul.f32 %v2203_v5, %v2198_v7  ;;  %v2199_v11 = vadd.f32 %v3668_v28, %v2189_v8  ;;  %v2301_v28 = vld [vmem:[#allocation15 + $0x120] sm:$0xff]  ;;  %v3707_v7 = vcombine.high %v2298_v32, %v2302_v4  ;;  %v2279_v32 = vld [vmem:[#allocation15 + $0x70] sm:$0xff]  ;;  %v2280_v4 = vld [vmem:[#allocation15 + $0x78] sm:$0xff] }
 0xc7f   : > { %v5439_v19 = vadd.f32 %v4393_v18, %v2206_v15  ;;  %2697 = vmatprep.subr.bf16.mxu0 %v3697_v62  ;;  %v3705_v3 = vcombine.high %v2297_v2, %v2301_v28  ;;  %v2305_v8 = vld [vmem:[#allocation15 + $0x140] sm:$0xff] }
 0xc80   : > { %v2205_v12 = vmul.f32 %v2203_v5, %v2199_v11  ;;  %v5431_v14 = vadd.f32 %v4391_v13, %v2204_v10  ;;  %2698 = vmatpush1.bf16.msra.mxu0 %v3696_v0  ;;  %v3704_v5 = vcombine.low %v2297_v2, %v2301_v28  ;;  %2750 = vmatprep.subr.bf16.mxu1 %v3707_v7  ;;  %v2306_v10 = vld [vmem:[#allocation15 + $0x148] sm:$0xff]  ;;  %v2313_v18 = vld [vmem:[#allocation15 + $0x180] sm:$0xff]  ;;  %v2275_v2 = vld [vmem:[#allocation15 + $0x50] sm:$0xff] }
 0xc81   : > { %2699 = vmatprep.subr.bf16.mxu0 %v3705_v3  ;;  %2751 = vmatpush1.bf16.msra.mxu1 %v3706_v6  ;;  %v3713_v11 = vcombine.high %v2305_v8, %v2309_v9  ;;  %v3712_v13 = vcombine.low %v2305_v8, %v2309_v9  ;;  %v3721_v22 = vcombine.high %v2313_v18, %v2317_v20  ;;  %v3670_v60 = vld [vmem:[%s5804_s24] ss:$0 sm:$0xff]  ;;  %v2276_v3 = vld [vmem:[#allocation15 + $0x58] sm:$0xff]  ;;  %s5672_s24 = scalar_lea.hbm %s5808_s19, %s4090_s9 }
 0xc82   : > { %2212 = vadd.xlane.f32.xlu1 %v5431_v14  ;;  %v5435_v17 = vadd.f32 %v4392_v16, %v2205_v12  ;;  %v2310_v12 = vld [vmem:[#allocation15 + $0x168] sm:$0xff]  ;;  %v3720_v24 = vcombine.low %v2313_v18, %v2317_v20  ;;  %v3671_v1 = vld [vmem:[%s5805_s18] ss:$0 sm:$0xff]  ;;  %v3687_v9 = vcombine.high %v2276_v3, %v2280_v4  ;;  %s4671_s18 = scalar_lea.vmem %s4670_s26, 768 }
 0xc83   : > { %v3714_v15 = vcombine.low %v2306_v10, %v2310_v12  ;;  %v3715_v16 = vcombine.high %v2306_v10, %v2310_v12  ;;  %v2284_v12 = vld [vmem:[#allocation15 + $0x98] sm:$0xff]  ;;  %p4673_p8 = scmp.lt.s32.totalorder %s4671_s18, %s4665_s7 }
 0xc84   : > { %2214 = vadd.xlane.f32.xlu0 %v5435_v17  ;;  %2700 = vmatpush1.bf16.msra.mxu0 %v3704_v5 }
 0xc85   : > { %2701 = vmatprep.subr.bf16.mxu0 %v3713_v11  ;;  %2752 = vmatprep.subr.bf16.mxu1 %v3715_v16  ;;  %v2287_v11 = vld [vmem:[#allocation15 + $0xb0] sm:$0xff]  ;;  %v3686_v16 = vcombine.low %v2276_v3, %v2280_v4  ;;  %v4273_v4 = vld [vmem:[#allocation17 + $0x40] sm:$0xff]   ;;  %p4674_p13 = por %p4673_p8, %p4672_p5 }
 0xc86   : > { %2753 = vmatpush1.bf16.msra.mxu1 %v3714_v15  ;;  %v3684_v15 = vcombine.low %v2275_v2, %v2279_v32 }
 0xc87   : > { %2754 = vmatprep.subr.bf16.mxu1 %v3723_v27  ;;  %p4675_p7 = pnand %p4674_p13, %p4668_p1 }
 0xc88   : > { %2216 = vadd.xlane.f32.xlu0 %v5439_v19  ;;  %2702 = vmatpush1.bf16.msra.mxu0 %v3712_v13  ;;  %v2288_v13 = vld [vmem:[#allocation15 + $0xb8] sm:$0xff] }
 0xc89   : > { %2703 = vmatprep.subr.bf16.mxu0 %v3721_v22  ;;  %v3695_v18 = vcombine.high %v2284_v12, %v2288_v13  ;;  %v2295_v22 = vld [vmem:[#allocation15 + $0xf0] sm:$0xff]  ;;  %v3694_v27 = vcombine.low %v2284_v12, %v2288_v13  ;;  %v4285_v13 = vld [vmem:[#allocation17 + $0x58] sm:$0xff]  }
 0xc8a   : > { %2755 = vmatpush1.bf16.msra.mxu1 %v3722_v25  ;;  %v3701_v31 = vcombine.high %v2291_v21, %v2295_v22  ;;  %v4284_v12 = vld [vmem:[#allocation17 + $0x90] sm:$0xff]  }
 0xc8b   : > { %2756 = vmatprep.subr.bf16.mxu1 %v3731_v42  ;;  %v3700_v42 = vcombine.low %v2291_v21, %v2295_v22  ;;  %v4291_v21 = vld [vmem:[#allocation17 + $0x20] sm:$0xff]  }
 0xc8c   : > { %2704 = vmatpush1.bf16.msra.mxu0 %v3720_v24  ;;  %v2296_v24 = vld [vmem:[#allocation15 + $0xf8] sm:$0xff]  ;;  %v4292_v22 = vld [vmem:[#allocation17 + $0xa0] sm:$0xff]  }
 0xc8d   : > { %2705 = vmatprep.subr.bf16.mxu0 %v3729_v34  ;;  %v3703_v33 = vcombine.high %v2292_v23, %v2296_v24  ;;  %v2299_v34 = vld [vmem:[#allocation15 + $0x110] sm:$0xff] }
 0xc8e   : > { %2757 = vmatpush1.bf16.msra.mxu1 %v3730_v39  ;;  %v2304_v39 = vld [vmem:[#allocation15 + $0x138] sm:$0xff] }
 0xc90   : > { %2706 = vmatpush1.bf16.msra.mxu0 %v3728_v38  ;;  %v2300_v38 = vld [vmem:[#allocation15 + $0x118] sm:$0xff] }
 0xd0f   : > { %v2213_v45 = vpop.xlane.xlu1 %2212 }
 0xd10   : > { %v2218_v40 = vmul.f32 0.0078125, %v2213_v45  ;;  %v2271_v45 = vld [vmem:[#allocation15 + $0x30] sm:$0xff] }
 0xd11   : > { %v2215_v46 = vpop.xlane.xlu0 %2214 }
 0xd12   : > { %v5443_v47 = vsub.f32 %v5431_v14, %v2218_v40  ;;  %v2219_v36 = vmul.f32 0.0078125, %v2215_v46  ;;  %v2268_v40 = vld [vmem:[#allocation15 + $0x18] sm:$0xff]  ;;  %v3676_v46 = vcombine.low %v2267_v44, %v2271_v45 }
 0xd14   : > { %v5446_v41 = vsub.f32 %v5435_v17, %v2219_v36  ;;  %v2224_v29 = vmul.f32 %v5443_v47, %v5443_v47  ;;  %v3677_v36 = vcombine.high %v2267_v44, %v2271_v45  ;;  %v3702_v44 = vcombine.low %v2292_v23, %v2296_v24  ;;  %v4293_v23 = vld [vmem:[#allocation17 + $0x68] sm:$0xff]  }
 0xd15   : > { %v2217_v43 = vpop.xlane.xlu0 %2216  ;;  %v3709_v45 = vcombine.high %v2299_v34, %v2303_v35  ;;  %v4294_v24 = vld [vmem:[#allocation17 + $0xe8] sm:$0xff]  }
 0xd16   : > { %v2220_v37 = vmul.f32 0.0078125, %v2217_v43  ;;  %2227 = vadd.xlane.f32.xlu1 %v2224_v29  ;;  %v2225_v48 = vmul.f32 %v5446_v41, %v5446_v41  ;;  %v2272_v29 = vld [vmem:[#allocation15 + $0x38] sm:$0xff]  ;;  %v4778_v43 = vmov 0   ;;  %2793 = vmatprep.subr.bf16.mxu0 %v3677_v36  ;;  %v2311_v36 = vld [vmem:[#allocation15 + $0x170] sm:$0xff] }
 0xd17   : > { %2723 = vmatprep.mubr.bf16.mxu0 %v4778_v43  ;;  %2774 = vmatprep.mubr.bf16.mxu1 %v4778_v43 }
 0xd18   : > { %v5453_v49 = vsub.f32 %v5439_v19, %v2220_v37  ;;  %2229 = vadd.xlane.f32.xlu0 %v2225_v48  ;;  %v3678_v37 = vcombine.low %v2268_v40, %v2272_v29  ;;  %v3679_v48 = vcombine.high %v2268_v40, %v2272_v29  ;;  %v3711_v40 = vcombine.high %v2300_v38, %v2304_v39  ;;  %v2308_v29 = vld [vmem:[#allocation15 + $0x158] sm:$0xff] }
 0xd1a   : > { %v2226_v50 = vmul.f32 %v5453_v49, %v5453_v49  ;;  %2844 = vmatprep.subr.bf16.mxu1 %v3679_v48  ;;  %v3708_v48 = vcombine.low %v2299_v34, %v2303_v35  ;;  %v4300_v34 = vld [vmem:[#allocation17 + $0xb0] sm:$0xff]   ;;  %v4301_v35 = vld [vmem:[#allocation17 + $0x78] sm:$0xff]  }
 0xd1c   : > { %2231 = vadd.xlane.f32.xlu1 %v2226_v50 }
 0xda3   : > { %v2228_v50 = vpop.xlane.xlu1 %2227 }
 0xda4   : > { %v2233_v51 = vmul.f32 0.0078125, %v2228_v50  ;;  %v3710_v50 = vcombine.low %v2300_v38, %v2304_v39  ;;  %v4302_v38 = vld [vmem:[#allocation17 + $0xf8] sm:$0xff]  }
 0xda5   : > { %v2230_v52 = vpop.xlane.xlu0 %2229  ;;  %v4303_v39 = vld [vmem:[#allocation17 + $0x38] sm:$0xff]  }
 0xda6   : > { %v2236_v53 = vadd.f32 1e-05, %v2233_v51  ;;  %v2234_v54 = vmul.f32 0.0078125, %v2230_v52 }
 0xda8   : > { %4361 = vrsqrt.f32 %v2236_v53  ;;  %v2237_v55 = vadd.f32 1e-05, %v2234_v54  ;;  %v2315_v53 = vld [vmem:[#allocation15 + $0x190] sm:$0xff] }
 0xda9   : > { %v2232_v56 = vpop.xlane.xlu1 %2231  ;;  %v2319_v54 = vld [vmem:[#allocation15 + $0x1b0] sm:$0xff] }
 0xdaa   : > { %4363 = vrsqrt.f32 %v2237_v55  ;;  %v2235_v57 = vmul.f32 0.0078125, %v2232_v56  ;;  %v2316_v55 = vld [vmem:[#allocation15 + $0x198] sm:$0xff] }
 0xdab   : > { %v2320_v56 = vld [vmem:[#allocation15 + $0x1b8] sm:$0xff] }
 0xdac   : > { %v2238_v58 = vadd.f32 1e-05, %v2235_v57 }
 0xdae   : > { %4365 = vrsqrt.f32 %v2238_v58 }
 0xdb2   : > { %v4362_v59 = vpop.eup %4361 }
 0xdb3   : > { %v2242_v61 = vmul.f32 %v4362_v59, %v5443_v47  ;;  %v3685_v47 = vcombine.high %v2275_v2, %v2279_v32  ;;  %v3725_v59 = vcombine.high %v2315_v53, %v2319_v54 }
 0xdb4   : > { %v4364_v62 = vpop.eup %4363 }
 0xdb5   : > { %v2243_v63 = vmul.f32 %v4364_v62, %v5446_v41  ;;  %v2251_v0 = vmul.f32 %v3670_v60, %v2242_v61  ;;  %v2283_v41 = vld [vmem:[#allocation15 + $0x90] sm:$0xff] }
 0xdb6   : > { %v3692_v25 = vcombine.low %v2283_v41, %v2287_v11  ;;  %v2323_v61 = vld [vmem:[#allocation15 + $0x1d0] sm:$0xff] }
 0xdb7   : > { %v2252_v26 = vmul.f32 %v3670_v60, %v2243_v63  ;;  %v2260_v6 = vadd.f32 %v3671_v1, %v2251_v0  ;;  %v2327_v62 = vld [vmem:[#allocation15 + $0x1f0] sm:$0xff]  ;;  %v2324_v63 = vld [vmem:[#allocation15 + $0x1d8] sm:$0xff] }
 0xdb8   : > { %v4366_v28 = vpop.eup %4365  ;;  %v2328_v0 = vld [vmem:[#allocation15 + $0x1f8] sm:$0xff]  ;;  %v3733_v2 = vcombine.high %v2323_v61, %v2327_v62  ;;  %v3732_v32 = vcombine.low %v2323_v61, %v2327_v62 }
 0xdb9   : > { %v2244_v5 = vmul.f32 %v4366_v28, %v5453_v49  ;;  %v2261_v7 = vadd.f32 %v3671_v1, %v2252_v26  ;;  %v3693_v49 = vcombine.high %v2283_v41, %v2287_v11  ;;  %v3726_v26 = vcombine.low %v2316_v55, %v2320_v56  ;;  %v4280_v41 = vld [vmem:[#allocation17 + $0x88] sm:$0xff]   ;;  %v4283_v11 = vld [vmem:[#allocation17 + $0x10] sm:$0xff]  }
 0xdba   : > { %v3735_v28 = vcombine.high %v2324_v63, %v2328_v0  ;;  %v3734_v3 = vcombine.low %v2324_v63, %v2328_v0  ;;  %v5519_v0 = vld [vmem:[%s5806_s6] sm:$0xff] }
 0xdbb   : > { %v5468_v8 = vpack.c.bf16 %v2261_v7, %v2260_v6  ;;  %v2253_v10 = vmul.f32 %v3670_v60, %v2244_v5  ;;  %v3727_v60 = vcombine.high %v2316_v55, %v2320_v56  ;;  %v4274_v5 = vld [vmem:[#allocation17 + $0xc0] sm:$0xff]  }
 0xdbc   : > { %v4275_v6 = vld [vmem:[#allocation17] sm:$0xff]  }
 0xdbd   : > { %2724 = vmatmul.mubr.bf16.vlgmr.msra.gmra.mrb[32].mxu0 %v5468_v8  ;;  %2775 = vmatmul.mubr.bf16.vlgmr.msra.gmra.mrb[32].mxu1 %v5468_v8  ;;  %v2262_v20 = vadd.f32 %v3671_v1, %v2253_v10  ;;  %v3724_v1 = vcombine.low %v2315_v53, %v2319_v54  ;;  %v4276_v7 = vld [vmem:[#allocation17 + $0x80] sm:$0xff]   ;;  %v4282_v10 = vld [vmem:[#allocation17 + $0xd0] sm:$0xff]  }
 0xdbe   : > { %2794 = vmatpush1.bf16.msra.mxu0 %v3676_v46  ;;  %2845 = vmatpush1.bf16.msra.mxu1 %v3678_v37  ;;  %v2307_v46 = vld [vmem:[#allocation15 + $0x150] sm:$0xff]  ;;  %v2312_v37 = vld [vmem:[#allocation15 + $0x178] sm:$0xff] }
 0xdbf   : > { %2795 = vmatprep.subr.bf16.mxu0 %v3685_v47  ;;  %2846 = vmatprep.subr.bf16.mxu1 %v3687_v9  ;;  %v5474_v30 = vpack.c.bf16 %v2262_v20, %v2262_v20  ;;  %v3717_v51 = vcombine.high %v2307_v46, %v2311_v36  ;;  %v3719_v52 = vcombine.high %v2308_v29, %v2312_v37  ;;  %v4277_v47 = vld [vmem:[#allocation17 + $0x48] sm:$0xff]   ;;  %v4290_v20 = vld [vmem:[#allocation17 + $0xe0] sm:$0xff]  }
 0xdc0   : > { %2733 = vmatprep.mubr.bf16.mxu0 %v4778_v43  ;;  %2784 = vmatprep.mubr.bf16.mxu1 %v4778_v43  ;;  %v3716_v57 = vcombine.low %v2307_v46, %v2311_v36  ;;  %v3718_v58 = vcombine.low %v2308_v29, %v2312_v37  ;;  %v4278_v9 = vld [vmem:[#allocation17 + $0xc8] sm:$0xff]  }
 0xdc2   : > { %2796 = vmatpush1.bf16.msra.mxu0 %v3684_v15  ;;  %2847 = vmatpush1.bf16.msra.mxu1 %v3686_v16  ;;  %v4286_v15 = vld [vmem:[#allocation17 + $0xd8] sm:$0xff]  }
 0xdc3   : > { %2797 = vmatprep.subr.bf16.mxu0 %v3693_v49  ;;  %2848 = vmatprep.subr.bf16.mxu1 %v3695_v18  ;;  %v4287_v16 = vld [vmem:[#allocation17 + $0x18] sm:$0xff]   ;;  %v4289_v18 = vld [vmem:[#allocation17 + $0x60] sm:$0xff]  }
 0xdc4   : > { %v4288_v49 = vld [vmem:[#allocation17 + $0x98] sm:$0xff]  }
 0xdc5   : > { %2734 = vmatmul.mubr.bf16.gmra.mrb[36].mxu0 %v5474_v30  ;;  %2785 = vmatmul.mubr.bf16.gmra.mrb[36].mxu1 %v5474_v30 }
 0xdc6   : > { %2798 = vmatpush1.bf16.msra.mxu0 %v3692_v25  ;;  %2849 = vmatpush1.bf16.msra.mxu1 %v3694_v27  ;;  %v4295_v25 = vld [vmem:[#allocation17 + $0x28] sm:$0xff]  }
 0xdc7   : > { %2799 = vmatprep.subr.bf16.mxu0 %v3701_v31  ;;  %2850 = vmatprep.subr.bf16.mxu1 %v3703_v33  ;;  %v4296_v27 = vld [vmem:[#allocation17 + $0xa8] sm:$0xff]   ;;  %v4298_v31 = vld [vmem:[#allocation17 + $0xf0] sm:$0xff]  }
 0xdc8   : > { %2825 = vmatprep.mubr.bf16.mxu0 %v4778_v43  ;;  %2876 = vmatprep.mubr.bf16.mxu1 %v4778_v43  ;;  %v4299_v33 = vld [vmem:[#allocation17 + $0x30] sm:$0xff]  }
 0xdca   : > { %2800 = vmatpush1.bf16.msra.mxu0 %v3700_v42  ;;  %2851 = vmatpush1.bf16.msra.mxu1 %v3702_v44  ;;  %v4304_v42 = vld [vmem:[#allocation17 + $0xb8] sm:$0xff]  }
 0xdcb   : > { %2801 = vmatprep.subr.bf16.mxu0 %v3709_v45  ;;  %2852 = vmatprep.subr.bf16.mxu1 %v3711_v40 }
 0xdce   : > { %2802 = vmatpush1.bf16.msra.mxu0 %v3708_v48  ;;  %2853 = vmatpush1.bf16.msra.mxu1 %v3710_v50 }
 0xdcf   : > { %2803 = vmatprep.subr.bf16.mxu0 %v3717_v51  ;;  %2854 = vmatprep.subr.bf16.mxu1 %v3719_v52 }
 0xdd2   : > { %2804 = vmatpush1.bf16.msra.mxu0 %v3716_v57  ;;  %2855 = vmatpush1.bf16.msra.mxu1 %v3718_v58  ;;  %v2331_v58 = vlaneseq }
 0xdd3   : > { %2805 = vmatprep.subr.bf16.mxu0 %v3725_v59  ;;  %2856 = vmatprep.subr.bf16.mxu1 %v3727_v60 }
 0xdd4   : > { %v5510_v59 = vshrl.u32 %v2331_v58, 7 }
 0xdd6   : > { %2806 = vmatpush1.bf16.msra.mxu0 %v3724_v1  ;;  %2857 = vmatpush1.bf16.msra.mxu1 %v3726_v26  ;;  %v2349_v60 = vsub.s32 4, %v5510_v59  ;;  %v2357_v61 = vsub.s32 6, %v5510_v59  ;;  %v2353_v62 = vsub.s32 5, %v5510_v59  ;;  %v2361_v63 = vsub.s32 7, %v5510_v59 }
 0xdd7   : > { %2807 = vmatprep.subr.bf16.mxu0 %v3733_v2  ;;  %2858 = vmatprep.subr.bf16.mxu1 %v3735_v28 }
 0xdd8   : > { %v2350_v1 = vrot.slane %v5519_v0, %v2349_v60  ;;  %v2358_v26 = vrot.slane %v5519_v0, %v2357_v61  ;;  %v5524_v2 = vrot.slane %v5519_v0, %v2353_v62  ;;  %v5527_v28 = vrot.slane %v5519_v0, %v2361_v63 }
 0xdda   : > { %2808 = vmatpush1.bf16.msra.mxu0 %v3732_v32  ;;  %2859 = vmatpush1.bf16.msra.mxu1 %v3734_v3 }
 0xddb   : > { %3855 = vmatprep.subr.bf16.mxu0 %v4273_v4  ;;  %3883 = vmatprep.subr.bf16.mxu1 %v4274_v5 }
 0xddd   : > { %2826 = vmatmul.mubr.bf16.vlgmr.msra.gmra.mrb[40].mxu0 %v5468_v8  ;;  %2877 = vmatmul.mubr.bf16.vlgmr.msra.gmra.mrb[40].mxu1 %v5468_v8  ;;  %v4279_v8 = vld [vmem:[#allocation17 + $0x8] sm:$0xff]  }
 0xdde   : > { %2835 = vmatprep.mubr.bf16.mxu0 %v4778_v43  ;;  %2886 = vmatprep.mubr.bf16.mxu1 %v4778_v43  ;;  %v4281_v43 = vld [vmem:[#allocation17 + $0x50] sm:$0xff]  }
 0xddf   : > { %3856 = vmatpush3.bf16.msra.mxu0 %v4275_v6  ;;  %3884 = vmatpush3.bf16.msra.mxu1 %v4276_v7 }
 0xde0   : > { %3857 = vmatprep.subr.bf16.mxu0 %v4277_v47  ;;  %3885 = vmatprep.subr.bf16.mxu1 %v4278_v9 }
 0xde3   : > { %3858 = vmatpush3.bf16.msra.mxu0 %v4279_v8  ;;  %3886 = vmatpush3.bf16.msra.mxu1 %v4280_v41 }
 0xde4   : > { %3859 = vmatprep.subr.bf16.mxu0 %v4281_v43  ;;  %3887 = vmatprep.subr.bf16.mxu1 %v4282_v10 }
 0xde5   : > { %2836 = vmatmul.mubr.bf16.gmra.mrb[44].mxu0 %v5474_v30  ;;  %2887 = vmatmul.mubr.bf16.gmra.mrb[44].mxu1 %v5474_v30  ;;  %v4297_v30 = vld [vmem:[#allocation17 + $0x70] sm:$0xff]  }
 0xde7   : > { %3860 = vmatpush3.bf16.msra.mxu0 %v4283_v11  ;;  %3888 = vmatpush3.bf16.msra.mxu1 %v4284_v12 }
 0xde8   : > { %3861 = vmatprep.subr.bf16.mxu0 %v4285_v13  ;;  %3889 = vmatprep.subr.bf16.mxu1 %v4286_v15 }
 0xdeb   : > { %3862 = vmatpush3.bf16.msra.mxu0 %v4287_v16  ;;  %3890 = vmatpush3.bf16.msra.mxu1 %v4288_v49 }
 0xdec   : > { %3863 = vmatprep.subr.bf16.mxu0 %v4289_v18  ;;  %3891 = vmatprep.subr.bf16.mxu1 %v4290_v20 }
 0xdef   : > { %3864 = vmatpush3.bf16.msra.mxu0 %v4291_v21  ;;  %3892 = vmatpush3.bf16.msra.mxu1 %v4292_v22 }
 0xdf0   : > { %3865 = vmatprep.subr.bf16.mxu0 %v4293_v23  ;;  %3893 = vmatprep.subr.bf16.mxu1 %v4294_v24  ;;  %v2333_v23 = vsub.s32 0, %v5510_v59 }
 0xdf3   : > { %3866 = vmatpush3.bf16.msra.mxu0 %v4295_v25  ;;  %3894 = vmatpush3.bf16.msra.mxu1 %v4296_v27 }
 0xdf4   : > { %3867 = vmatprep.subr.bf16.mxu0 %v4297_v30  ;;  %3895 = vmatprep.subr.bf16.mxu1 %v4298_v31  ;;  %v2341_v30 = vsub.s32 2, %v5510_v59 }
 0xdf7   : > { %3868 = vmatpush3.bf16.msra.mxu0 %v4299_v33  ;;  %3896 = vmatpush3.bf16.msra.mxu1 %v4300_v34 }
 0xdf8   : > { %3869 = vmatprep.subr.bf16.mxu0 %v4301_v35  ;;  %3897 = vmatprep.subr.bf16.mxu1 %v4302_v38  ;;  %v2337_v35 = vsub.s32 1, %v5510_v59 }
 0xdfb   : > { %3870 = vmatpush3.bf16.msra.mxu0 %v4303_v39  ;;  %3898 = vmatpush3.bf16.msra.mxu1 %v4304_v42 }
 0xe90   : > { %v5486_v44 = vpop.f32.mrb[32].mxu0  ;;  %v5488_v45 = vpop.f32.mrb[32].mxu1 }
 0xe91   : > { %v5490_v40 = vpop.f32.mrb[33].mxu0  ;;  %v5492_v46 = vpop.f32.mrb[33].mxu1 }
 0xe92   : > { %v5494_v36 = vpop.f32.mrb[34].mxu0  ;;  %v5496_v29 = vpop.f32.mrb[34].mxu1 }
 0xe93   : > { %v5498_v37 = vpop.f32.mrb[35].mxu0  ;;  %v5500_v48 = vpop.f32.mrb[35].mxu1 }
 0xe98   : > { %v5502_v50 = vpop.f32.mrb[36].mxu0  ;;  %v5504_v51 = vpop.f32.mrb[36].mxu1 }
 0xe99   : > { %v5506_v52 = vpop.f32.mrb[37].mxu0  ;;  %v5508_v53 = vpop.f32.mrb[37].mxu1 }
 0xe9a   : > { %v2739_v54 = vpop.f32.mrb[38].mxu0  ;;  %v2790_v55 = vpop.f32.mrb[38].mxu1 }
 0xe9b   : > { %v2740_v56 = vpop.f32.mrb[39].mxu0  ;;  %v2791_v57 = vpop.f32.mrb[39].mxu1 }
 0xeb0   : > { %v2827_v32 = vpop.f32.mrb[40].mxu0  ;;  %v2878_v3 = vpop.f32.mrb[40].mxu1 }
 0xeb1   : > { %v5529_v4 = vadd.f32 %v2827_v32, %v2350_v1  ;;  %v5531_v5 = vadd.f32 %v2878_v3, %v2358_v26  ;;  %v2829_v6 = vpop.f32.mrb[41].mxu0  ;;  %v2880_v7 = vpop.f32.mrb[41].mxu1 }
 0xeb2   : > { %v5534_v47 = vadd.f32 %v2829_v6, %v5524_v2  ;;  %v5537_v9 = vadd.f32 %v2880_v7, %v5527_v28  ;;  %v2831_v8 = vpop.f32.mrb[42].mxu0  ;;  %v2882_v41 = vpop.f32.mrb[42].mxu1 }
 0xeb3   : > { %v2907_v43 = vmul.f32 0.044715, %v5529_v4  ;;  %v2909_v10 = vmul.f32 0.044715, %v5531_v5  ;;  %v5543_v13 = vadd.f32 %v2831_v8, %v2350_v1  ;;  %v5545_v15 = vadd.f32 %v2882_v41, %v2358_v26  ;;  %v2833_v16 = vpop.f32.mrb[43].mxu0  ;;  %v2884_v49 = vpop.f32.mrb[43].mxu1 }
 0xeb4   : > { %v2908_v11 = vmul.f32 0.044715, %v5534_v47  ;;  %v2910_v12 = vmul.f32 0.044715, %v5537_v9  ;;  %v5550_v21 = vadd.f32 %v2833_v16, %v5524_v2  ;;  %v5553_v22 = vadd.f32 %v2884_v49, %v5527_v28 }
 0xeb5   : > { %v2919_v18 = vmul.f32 %v2907_v43, %v5529_v4  ;;  %v2921_v20 = vmul.f32 %v2909_v10, %v5531_v5  ;;  %v2911_v27 = vmul.f32 0.044715, %v5543_v13  ;;  %v2913_v34 = vmul.f32 0.044715, %v5545_v15 }
 0xeb6   : > { %v2920_v24 = vmul.f32 %v2908_v11, %v5534_v47  ;;  %v2922_v25 = vmul.f32 %v2910_v12, %v5537_v9  ;;  %v2912_v42 = vmul.f32 0.044715, %v5550_v21  ;;  %v2914_v60 = vmul.f32 0.044715, %v5553_v22 }
 0xeb7   : > { %v2931_v31 = vmul.f32 %v2919_v18, %v5529_v4  ;;  %v2933_v33 = vmul.f32 %v2921_v20, %v5531_v5  ;;  %v2923_v39 = vmul.f32 %v2911_v27, %v5543_v13  ;;  %v2925_v58 = vmul.f32 %v2913_v34, %v5545_v15 }
 0xeb8   : > { %v2932_v38 = vmul.f32 %v2920_v24, %v5534_v47  ;;  %v2837_v54 = vpop.f32.mrb[44].mxu0  ;;  %v2888_v55 = vpop.f32.mrb[44].mxu1  ;;  %v2934_v32 = vmul.f32 %v2922_v25, %v5537_v9  ;;  %v2924_v6 = vmul.f32 %v2912_v42, %v5550_v21  ;;  %v2926_v11 = vmul.f32 %v2914_v60, %v5553_v22 }
 0xeb9   : > { %v2943_v56 = vadd.f32 %v2931_v31, %v5529_v4  ;;  %v2945_v57 = vadd.f32 %v2933_v33, %v5531_v5  ;;  %v2839_v61 = vpop.f32.mrb[45].mxu0  ;;  %v2890_v62 = vpop.f32.mrb[45].mxu1  ;;  %v2935_v3 = vmul.f32 %v2923_v39, %v5543_v13  ;;  %v2937_v10 = vmul.f32 %v2925_v58, %v5545_v15 }
 0xeba   : > { %v2944_v63 = vadd.f32 %v2932_v38, %v5534_v47  ;;  %v2841_v7 = vpop.f32.mrb[46].mxu0  ;;  %v2892_v8 = vpop.f32.mrb[46].mxu1  ;;  %v2936_v18 = vmul.f32 %v2924_v6, %v5550_v21  ;;  %v5579_v20 = vadd.f32 %v2837_v54, %v2350_v1  ;;  %v5581_v24 = vadd.f32 %v2888_v55, %v2358_v26 }
 0xebb   : > { %v2955_v41 = vmul.f32 0.7978846, %v2943_v56  ;;  %v2957_v43 = vmul.f32 0.7978846, %v2945_v57  ;;  %v2842_v12 = vpop.f32.mrb[47].mxu0  ;;  %v2893_v16 = vpop.f32.mrb[47].mxu1  ;;  %v2947_v49 = vadd.f32 %v2935_v3, %v5543_v13  ;;  %v2949_v25 = vadd.f32 %v2937_v10, %v5545_v15 }
 0xebc   : > { %v2938_v27 = vmul.f32 %v2926_v11, %v5553_v22  ;;  %v5586_v31 = vadd.f32 %v2839_v61, %v5524_v2  ;;  %v2948_v34 = vadd.f32 %v2936_v18, %v5550_v21  ;;  %v2915_v38 = vmul.f32 0.044715, %v5579_v20 }
 0xebd   : > { %4367 = vtanh.f32 %v2955_v41  ;;  %v2959_v33 = vmul.f32 0.7978846, %v2947_v49  ;;  %v2946_v39 = vadd.f32 %v2934_v32, %v5537_v9  ;;  %v2961_v1 = vmul.f32 0.7978846, %v2949_v25 }
 0xebe   : > { %4369 = vtanh.f32 %v2957_v43  ;;  %v2917_v26 = vmul.f32 0.044715, %v5581_v24  ;;  %v2916_v42 = vmul.f32 0.044715, %v5586_v31  ;;  %v2950_v54 = vadd.f32 %v2938_v27, %v5553_v22 }
 0xebf   : > { %4371 = vtanh.f32 %v2959_v33  ;;  %v2927_v55 = vmul.f32 %v2915_v38, %v5579_v20  ;;  %v5596_v2 = vadd.f32 %v2890_v62, %v5527_v28  ;;  %v2345_v56 = vsub.s32 3, %v5510_v59 }
 0xec0   : > { %4373 = vtanh.f32 %v2961_v1  ;;  %v2929_v57 = vmul.f32 %v2917_v26, %v5581_v24  ;;  %v2928_v58 = vmul.f32 %v2916_v42, %v5586_v31  ;;  %v2956_v32 = vmul.f32 0.7978846, %v2944_v63 }
 0xec1   : > { %v2939_v60 = vmul.f32 %v2927_v55, %v5579_v20  ;;  %v2918_v61 = vmul.f32 0.044715, %v5596_v2  ;;  %v2960_v3 = vmul.f32 0.7978846, %v2948_v34  ;;  %v5604_v6 = vrot.slane %v5519_v0, %v2333_v23 }
 0xec2   : > { %v2941_v7 = vmul.f32 %v2929_v57, %v5581_v24  ;;  %v2940_v28 = vmul.f32 %v2928_v58, %v5586_v31  ;;  %4375 = vtanh.f32 %v2956_v32  ;;  %v2958_v8 = vmul.f32 0.7978846, %v2946_v39 }
 0xec3   : > { %v2930_v62 = vmul.f32 %v2918_v61, %v5596_v2  ;;  %v2962_v41 = vmul.f32 0.7978846, %v2950_v54  ;;  %v5612_v43 = vrot.slane %v5519_v0, %v2341_v30  ;;  %v5615_v63 = vrot.slane %v5519_v0, %v2337_v35 }
 0xec4   : > { %4377 = vtanh.f32 %v2960_v3  ;;  %v2952_v23 = vadd.f32 %v2940_v28, %v5586_v31  ;;  %v5619_v10 = vrot.slane %v5519_v0, %v2345_v56  ;;  %v2951_v12 = vadd.f32 %v2939_v60, %v5579_v20 }
 0xec5   : > { %v2942_v11 = vmul.f32 %v2930_v62, %v5596_v2  ;;  %4379 = vtanh.f32 %v2958_v8  ;;  %v2726_v59 = vadd.f32 %v5486_v44, %v5604_v6  ;;  %v2953_v35 = vadd.f32 %v2941_v7, %v5581_v24 }
 0xec6   : > { %4381 = vtanh.f32 %v2962_v41  ;;  %v2964_v30 = vmul.f32 0.7978846, %v2952_v23  ;;  %v2895_v18 = vmul.f32 0.5, %v5529_v4  ;;  %v2963_v27 = vmul.f32 0.7978846, %v2951_v12 }
 0xec7   : > { %v4368_v16 = vpop.eup %4367  ;;  %v2954_v0 = vadd.f32 %v2942_v11, %v5596_v2  ;;  %v2897_v33 = vmul.f32 0.5, %v5531_v5  ;;  %v2965_v38 = vmul.f32 0.7978846, %v2953_v35  ;;  %v2777_v44 = vadd.f32 %v5488_v45, %v5612_v43 }
 0xec8   : > { %v4370_v49 = vpop.eup %4369  ;;  %v2979_v25 = vadd.f32 1.0, %v4368_v16  ;;  %4383 = vtanh.f32 %v2964_v30  ;;  %v2899_v4 = vmul.f32 0.5, %v5543_v13  ;;  %v2901_v56 = vmul.f32 0.5, %v5545_v15 }
 0xec9   : > { %v2981_v34 = vadd.f32 1.0, %v4370_v49  ;;  %v4372_v39 = vpop.eup %4371  ;;  %v2966_v26 = vmul.f32 0.7978846, %v2954_v0  ;;  %4385 = vtanh.f32 %v2963_v27  ;;  %v2730_v58 = vadd.f32 %v5494_v36, %v5604_v6 }
 0xeca   : > { %v2991_v1 = vmul.f32 %v2979_v25, %v2895_v18  ;;  %v4374_v42 = vpop.eup %4373  ;;  %v2983_v55 = vadd.f32 1.0, %v4372_v39  ;;  %4387 = vtanh.f32 %v2965_v38  ;;  %v2728_v32 = vadd.f32 %v5490_v40, %v5615_v63 }
 0xecb   : > { %v2993_v54 = vmul.f32 %v2981_v34, %v2897_v33  ;;  %v2985_v57 = vadd.f32 1.0, %v4374_v42  ;;  %4389 = vtanh.f32 %v2966_v26  ;;  %v2781_v3 = vadd.f32 %v5496_v29, %v5612_v43 }
 0xecc   : > { %v3003_v5 = vmul.f32 %v2991_v1, %v2726_v59  ;;  %v2995_v60 = vmul.f32 %v2983_v55, %v2899_v4  ;;  %v4376_v45 = vpop.eup %4375  ;;  %v2779_v15 = vadd.f32 %v5492_v46, %v5619_v10  ;;  %v2896_v28 = vmul.f32 0.5, %v5534_v47 }
 0xecd   : > { %v3005_v61 = vmul.f32 %v2993_v54, %v2777_v44  ;;  %v2997_v13 = vmul.f32 %v2985_v57, %v2901_v56  ;;  %v2980_v62 = vadd.f32 1.0, %v4376_v45  ;;  %v2732_v36 = vadd.f32 %v5498_v37, %v5615_v63 }
 0xece   : > { %v4378_v7 = vpop.eup %4377  ;;  %v3007_v8 = vmul.f32 %v2995_v60, %v2730_v58  ;;  %v2900_v23 = vmul.f32 0.5, %v5550_v21  ;;  %v2898_v29 = vmul.f32 0.5, %v5537_v9  ;;  %v2902_v46 = vmul.f32 0.5, %v5553_v22 }
 0xecf   : > { %v4380_v41 = vpop.eup %4379  ;;  %v2984_v11 = vadd.f32 1.0, %v4378_v7  ;;  %v3009_v40 = vmul.f32 %v2997_v13, %v2781_v3  ;;  %v2992_v16 = vmul.f32 %v2980_v62, %v2896_v28  ;;  %v2783_v25 = vadd.f32 %v5500_v48, %v5619_v10 }
 0xed0   : > { %v4382_v12 = vpop.eup %4381  ;;  %v2982_v59 = vadd.f32 1.0, %v4380_v41  ;;  %v3015_v30 = vpack.c.bf16 %v3007_v8, %v3003_v5  ;;  %v2738_v37 = vadd.f32 %v5506_v52, %v5615_v63  ;;  %v2904_v9 = vmul.f32 0.5, %v5586_v31 }
 0xed1   : > { %v2996_v35 = vmul.f32 %v2984_v11, %v2900_v23  ;;  %v2986_v47 = vadd.f32 1.0, %v4382_v12  ;;  %v3017_v49 = vpack.c.bf16 %v3009_v40, %v3005_v61  ;;  %v3004_v21 = vmul.f32 %v2992_v16, %v2728_v32 }
 0xed2   : > { %v4384_v18 = vpop.eup %4383  ;;  %v2994_v0 = vmul.f32 %v2982_v59, %v2898_v29  ;;  %v2903_v22 = vmul.f32 0.5, %v5579_v20  ;;  %v2905_v26 = vmul.f32 0.5, %v5581_v24  ;;  %v2736_v63 = vadd.f32 %v5502_v50, %v5604_v6 }
 0xed3   : > { %v4386_v27 = vpop.eup %4385  ;;  %v3008_v33 = vmul.f32 %v2996_v35, %v2732_v36  ;;  %v2998_v34 = vmul.f32 %v2986_v47, %v2902_v46  ;;  %v2988_v38 = vadd.f32 1.0, %v4384_v18  ;;  %v2906_v55 = vmul.f32 0.5, %v5596_v2 }
 0xed4   : > { %v4388_v39 = vpop.eup %4387  ;;  %v3006_v44 = vmul.f32 %v2994_v0, %v2779_v15  ;;  %v2987_v1 = vadd.f32 1.0, %v4386_v27  ;;  %v2787_v57 = vadd.f32 %v5504_v51, %v5612_v43  ;;  %v2789_v24 = vadd.f32 %v5508_v53, %v5619_v10  ;;  %v3736_v53 = vld [vmem:[%s5807_s4] ss:$0 sm:$0xff] }
 0xed5   : > { %v4390_v42 = vpop.eup %4389  ;;  %v3016_v48 = vpack.c.bf16 %v3008_v33, %v3004_v21  ;;  %v3010_v54 = vmul.f32 %v2998_v34, %v2783_v25  ;;  %v3000_v4 = vmul.f32 %v2988_v38, %v2904_v9  ;;  %v2989_v52 = vadd.f32 1.0, %v4388_v39 }
 0xed6   : > { %v2990_v56 = vadd.f32 1.0, %v4390_v42  ;;  %v2999_v31 = vmul.f32 %v2987_v1, %v2903_v22  ;;  %v3382_v23 = vstv %s3669_s11 }
 0xed7   : > { %3318 = vmatprep.mubr.bf16.mxu0 %v3016_v48  ;;  %v3018_v20 = vpack.c.bf16 %v3010_v54, %v3006_v44  ;;  %v3012_v5 = vmul.f32 %v3000_v4, %v2738_v37  ;;  %v3001_v58 = vmul.f32 %v2989_v52, %v2905_v26 }
 0xed8   : > { %3319 = vmatmul.mubr.bf16.vlgmr.msra.gmra.mrb[48].mxu0 %v3015_v30  ;;  %v3002_v60 = vmul.f32 %v2990_v56, %v2906_v55  ;;  %v3011_v61 = vmul.f32 %v2999_v31, %v2736_v63 }
 0xed9   : > { %3366 = vmatprep.mubr.bf16.mxu1 %v3018_v20  ;;  %v3020_v45 = vpack.c.bf16 %v3012_v5, %v3012_v5  ;;  %v3013_v50 = vmul.f32 %v3001_v58, %v2787_v57 }
 0xeda   : > { %3367 = vmatmul.mubr.bf16.vlgmr.msra.gmra.mrb[48].mxu1 %v3017_v49  ;;  %v3014_v2 = vmul.f32 %v3002_v60, %v2789_v24  ;;  %v3019_v32 = vpack.c.bf16 %v3011_v61, %v3011_v61 }
 0xedb   : > { %3326 = vmatprep.mubr.bf16.mxu0 %v3020_v45  ;;  %v3021_v51 = vpack.c.bf16 %v3013_v50, %v3013_v50 }
 0xedc   : > { %v3022_v6 = vpack.c.bf16 %v3014_v2, %v3014_v2 }
 0xede   : > { %3374 = vmatprep.mubr.bf16.mxu1 %v3022_v6 }
 0xee0   : > { %3327 = vmatmul.mubr.bf16.gmra.mrb[52].mxu0 %v3019_v32 }
 0xee2   : > { %3375 = vmatmul.mubr.bf16.gmra.mrb[52].mxu1 %v3021_v51 }
 0xfab   : > { %v3871_v43 = vpop.f32.mrb[48].mxu0 }
 0xfac   : > { %v3872_v10 = vpop.f32.mrb[49].mxu0 }
 0xfad   : > { %v3899_v3 = vpop.f32.mrb[48].mxu1  ;;  %v3873_v13 = vadd.f32 %v3872_v10, %v3871_v43  ;;  %v3874_v7 = vpop.f32.mrb[50].mxu0 }
 0xfae   : > { %v3900_v15 = vpop.f32.mrb[49].mxu1  ;;  %v3875_v28 = vpop.f32.mrb[51].mxu0 }
 0xfaf   : > { %v3321_v62 = vadd.f32 %v3873_v13, %v3736_v53  ;;  %v3901_v8 = vadd.f32 %v3900_v15, %v3899_v3  ;;  %v3902_v41 = vpop.f32.mrb[50].mxu1  ;;  %v3876_v36 = vadd.f32 %v3875_v28, %v3874_v7 }
 0xfb0   : > { %v3903_v11 = vpop.f32.mrb[51].mxu1 }
 0xfb1   : > { %v3369_v40 = vadd.f32 %v3901_v8, %v3321_v62  ;;  %v3324_v12 = vadd.f32 %v3876_v36, %v3736_v53  ;;  %v3904_v16 = vadd.f32 %v3903_v11, %v3902_v41 }
 0xfb3   : > { %v3383_v29 = vmul.f32 %v3382_v23, %v3369_v40  ;;  %v3372_v59 = vadd.f32 %v3904_v16, %v3324_v12  ;;  %v3877_v30 = vpop.f32.mrb[52].mxu0 }
 0xfb4   : > { %v3878_v35 = vpop.f32.mrb[53].mxu0 }
 0xfb5   : > { %v3386_v46 = vadd.f32 %v3383_v29, %v5431_v14  ;;  %v3384_v47 = vmul.f32 %v3382_v23, %v3372_v59  ;;  %v3905_v49 = vpop.f32.mrb[52].mxu1  ;;  %v3879_v18 = vadd.f32 %v3878_v35, %v3877_v30  ;;  %v3880_v25 = vpop.f32.mrb[54].mxu0 }
 0xfb6   : > { %v3906_v37 = vpop.f32.mrb[53].mxu1  ;;  %v3881_v21 = vpop.f32.mrb[55].mxu0 }
 0xfb7   : > { %3389 = vst [vmem:[%s745_s14] sm:$0xff] %v3386_v46  ;;  %v3387_v0 = vadd.f32 %v3384_v47, %v5435_v17  ;;  %v3329_v27 = vadd.f32 %v3879_v18, %v3736_v53  ;;  %v3907_v33 = vadd.f32 %v3906_v37, %v3905_v49  ;;  %v3908_v34 = vpop.f32.mrb[54].mxu1 }
 0xfb8   : > { %v3909_v9 = vpop.f32.mrb[55].mxu1 }
 0xfb9   : > { %3390 = vst [vmem:[%s745_s14 + $0x8] sm:$0xff] %v3387_v0  ;;  %v3377_v14 = vadd.f32 %v3907_v33, %v3329_v27 }
 0xfbb   : > { %v3385_v38 = vmul.f32 %v3382_v23, %v3377_v14 }
 0xfbd   : > { %v3388_v39 = vadd.f32 %v3385_v38, %v5439_v19 }
 0xfbf   : > { %3391 = vst [vmem:[%s745_s14 + $0x10] sm:$0xff] %v3388_v39 }
 0xfc0   : > { %4678 = shalt.err (!%p4675_p7)
}
 0xfc1   : > { %s4679_s21 = scalar_lea.hbm %s5672_s24, 384  ;;  %s4683_s11 = scalar_lea.hbm %s5808_s19, 768 }
 0xfc2   : > { %p4680_p9 = scmp.ne.s32.totalorder %s5672_s24, %s4679_s21  ;;  %p4684_p12 = scmp.lt.u32.totalorder %s5672_s24, %s5808_s19 }
 0xfc3   : > { %p4685_p0 = scmp.lt.u32.totalorder %s4683_s11, %s4679_s21  ;;  %p4687_p3 = scmp.lt.u32.totalorder %s4679_s21, %s5672_s24 }
 0xfc4   : > { %p4681_p10 = pnand %p4680_p9, %p5809_p6 }
 0xfc5   : > { %p4686_p2 = por %p4685_p0, %p4684_p12 }
 0xfc6   : > { %p4682_p11 = pneg %p4681_p10 }
 0xfc7   : > { %p4688_p4 = por %p4687_p3, %p4686_p2 }
 0xfc9   : > { %p4689_p1 = pnand %p4688_p4, %p4682_p11 }
 0xfcb   : > { %4692 = shalt.err (!%p4689_p1)
}
 0xfcc   : > { %s4780_s4 = smov 128   ;;  %s4781_s14 = smov 8  }
 0xfcd   : > { %4127 = dma.vmem_to_hbm [thread:$0]  (%p5809_p6), %s5675_s13, 384, %s5672_s24, %s3393_s0, %s4780_s4, %s4780_s4, %s4781_s14  }
 0xfce PF: > { %s3421_s9 = sand.u32 1, %s4743_s27   ;;  %p5810_p5 = scmp.ne.s32.totalorder %s5784_s10, 0 }
 0xfcf   : > { %p5811_p8 = scmp.ge.s32.totalorder %s4755_s30, 2  ;;  %s3422_s20 = scalar_lea.sflag [#allocation4], %s3421_s9 }
 0xfd1   : > { %p4162_p13 = pnand %p5811_p8, %p5810_p5 }
 0xfd3   : > { %4738 = dma.done.wait (!%p4162_p13), %s3422_s20, 384  }
 0xfd4   : > { %4740 = vsyncadd (!%p4162_p13), %s3422_s20, 4294966912  ;;  %p38_p7 = scmp.ge.s32.totalorder %s5110_s16, 4   ;;  %s5812_s27 = smov %s4747_s28 }
 0xfd5   : > { %s5813_s28 = smov %s4751_s29  ;;  %s5814_s29 = smov %s5121_s22 }
 0xfd6   : > { %s5815_s30 = smov %s5110_s16  ;;  %40 = sbr.rel (!%p38_p7) target bundleno = 29 (0x1d), region = 186 }
 0xfdd   :  { %3427 = vsyncpa [#allocation3], 1 }
 0xfde   :  { %3429 = vsyncpa [#allocation3 + $0x1], 1 }
 0xfdf   :  { %3430 = vsyncpa [#allocation7], 1 }
 0xfe0   :  { %3432 = vsyncpa [#allocation7 + $0x1], 1 }
 0xfe1   :  { %3433 = vsyncpa [#allocation10], 1 }
 0xfe2   :  { %3434 = vsyncpa [#allocation13], 1 }
 0xfe3   :  { %3435 = vsyncpa [#allocation16], 1 }
 0xfe4   :  { %3436 = vsyncpa [#allocation4], 1 }
 0xfe5   :  { %3438 = vsyncpa [#allocation4 + $0x1], 1 }
 0xfe6   :  { %3439 = vsyncpa [#allocation5], 1 }
 0xfe7   :  { %3441 = vsyncpa [#allocation5 + $0x1], 1 }

</bundles_post_ra>
